<compile_context>
chip_gen: v6e
topology: v6e:2x2x1
jax: 0.10.0
libtpu: 0.0.40
codegen_flags: <defaults>
</compile_context>

<pallas_src>
import functools

import jax
import jax.numpy as jnp
import numpy as np
from jax.experimental import pallas as pl
from jax.experimental.pallas import tpu as pltpu

EPS = 1e-6
A_SCALE = 8.0  # RG-LRU constant "c"


# ----------------------------- math helpers (shared by kernel and reference) ----
def _gelu(v):
    # tanh-approximate GELU; lowers to the EUP tanh slot.
    c = 0.7978845608028654  # sqrt(2/pi)
    return 0.5 * v * (1.0 + jnp.tanh(c * (v + 0.044715 * v * v * v)))


def _sigmoid(v):
    # stable sigmoid via tanh (no inf intermediates).
    return 0.5 * (jnp.tanh(0.5 * v) + 1.0)


def _softplus(v):
    # overflow-safe softplus: max(v,0) + log(1 + exp(-|v|)).
    return jnp.maximum(v, 0.0) + jnp.log(1.0 + jnp.exp(-jnp.abs(v)))


def _one_minus_a_sq(log_a, a):
    # 1 - a^2 = 1 - exp(2*log_a), cancellation-free:
    #   1 - e^x = tanh(-x/2) * (1 + e^x)  with x = 2*log_a.
    return jnp.tanh(-log_a) * (1.0 + a * a)


# ----------------------------- Pallas kernel ----------------------------------
def _residual_block_kernel(
    # inputs
    x_ref, reset_ref,
    tscale_ref,
    wy_ref, by_ref, wx_ref, bx_ref,
    convw_ref, convb_ref,
    aparam_ref,
    wi_ref, bi_ref, wa_ref, ba_ref,
    wout_ref, bout_ref,
    cscale_ref,
    wupg_ref, bupg_ref, wupl_ref, bupl_ref,
    wdown_ref, bdown_ref,
    # outputs
    out_ref, conv_cache_ref, lru_cache_ref,
    # carried scratch (persists across the sequence-chunk grid axis)
    tail_scr, h_scr,
    *, compute_dtype,
):
    f32 = jnp.float32
    cdt = compute_dtype
    c = pl.program_id(1)                       # sequence-chunk index (innermost axis)

    raw = x_ref[...].astype(f32)               # [Bt, Tc, D]
    Bt, Tc, D = raw.shape
    K, L = convw_ref.shape
    H, hd, _ = wi_ref.shape

    # new batch tile -> reset carried state (conv zero left-pad, h0 = 0)
    @pl.when(c == 0)
    def _():
        tail_scr[...] = jnp.zeros_like(tail_scr)
        h_scr[...] = jnp.zeros_like(h_scr)

    def proj(v, w_ref, b_ref):
        b_, t_, din = v.shape
        w = w_ref[...]
        out = jnp.dot(v.reshape(b_ * t_, din).astype(cdt), w.astype(cdt),
                      preferred_element_type=f32)
        return out.reshape(b_, t_, w.shape[1]) + b_ref[...].astype(f32)

    def head_proj(v, w_ref, b_ref):
        # block-diagonal [H, hd, hd] gate weights applied per head (no dense LxL).
        b_, t_, l_ = v.shape
        v2d = v.reshape(b_ * t_, l_)
        outs = []
        for h in range(H):                     # H is small & static
            vh = v2d[:, h * hd:(h + 1) * hd]
            outs.append(jnp.dot(vh.astype(cdt), w_ref[h].astype(cdt),
                                preferred_element_type=f32))
        o = jnp.concatenate(outs, axis=-1).reshape(b_, t_, l_)
        return o + b_ref[...].astype(f32)

    def rmsnorm(v, scale_ref):
        var = jnp.mean(v * v, axis=-1, keepdims=True)
        return v * jax.lax.rsqrt(var + EPS) * (1.0 + scale_ref[...].astype(f32))

    reset = reset_ref[...].astype(f32)         # [Bt, Tc, 1] in {0, 1}

    # ---------------- temporal_pre_norm ----------------
    xn = rmsnorm(raw, tscale_ref)

    # ---------------- RecurrentBlock ----------------
    y_branch = _gelu(proj(xn, wy_ref, by_ref))          # [Bt, Tc, L]
    xx = proj(xn, wx_ref, bx_ref)                       # [Bt, Tc, L]

    # causal depthwise temporal conv, vectorized over the whole chunk.
    # xx_ext = [carried K-1 previous timesteps | current chunk]
    xx_ext = jnp.concatenate([tail_scr[...], xx], axis=1)   # [Bt, K-1+Tc, L]
    conv_w = convw_ref[...].astype(f32)                      # [K, L]
    xc = convb_ref[...].astype(f32) + conv_w[0:1, :] * xx_ext[:, 0:Tc, :]
    for i in range(1, K):
        xc = xc + conv_w[i:i + 1, :] * xx_ext[:, i:i + Tc, :]

    # update carried conv tail + cache output (last K-1 conv inputs seen so far)
    new_tail = xx_ext[:, Tc:, :]                             # [Bt, K-1, L]
    tail_scr[...] = new_tail
    conv_cache_ref[...] = new_tail.astype(conv_cache_ref.dtype)

    # RG-LRU gates (per-head block-diagonal linears)
    gate_x = _sigmoid(head_proj(xc, wi_ref, bi_ref))
    gate_a = _sigmoid(head_proj(xc, wa_ref, ba_ref))
    log_a = -A_SCALE * gate_a * _softplus(aparam_ref[...].astype(f32))
    a = jnp.exp(log_a)
    multiplier = jnp.sqrt(_one_minus_a_sq(log_a, a))
    multiplier = reset + (1.0 - reset) * multiplier          # 1 at segment starts
    nx = xc * gate_x * multiplier

    # linear recurrence  h_t = a_t * (1 - reset_t) * h_{t-1} + nx_t
    # (only the chunk is unrolled; state is carried across chunks via h_scr)
    h = h_scr[...]                                           # [Bt, 1, L]
    hs = []
    for t in range(Tc):
        h = a[:, t:t + 1, :] * (h * (1.0 - reset[:, t:t + 1, :])) + nx[:, t:t + 1, :]
        hs.append(h)
    lru_out = jnp.concatenate(hs, axis=1)                    # one full [Bt, Tc, L] slab
    h_scr[...] = h
    lru_cache_ref[...] = h

    rec_out = proj(lru_out * y_branch, wout_ref, bout_ref)   # [Bt, Tc, D]

    # residual 1 (dropout p = 0.0 -> identity)
    x_res = rec_out + raw

    # ---------------- channel_pre_norm + gated MLP ----------------
    xn2 = rmsnorm(x_res, cscale_ref)
    act = _gelu(proj(xn2, wupg_ref, bupg_ref)) * proj(xn2, wupl_ref, bupl_ref)
    mlp_out = proj(act, wdown_ref, bdown_ref)                # [Bt, Tc, D]

    # residual 2
    out_ref[...] = (mlp_out + x_res).astype(out_ref.dtype)


# ----------------------------- wrapper -----------------------------------------
def residual_block_forward(params, x, segment_pos=None, *,
                           seq_chunk=None, batch_tile=1, vmem_limit_bytes=None):
    B, T, D = x.shape
    L = params["wx"].shape[1]
    K = params["convw"].shape[0]
    H, hd, _ = params["wi"].shape
    E = params["wupg"].shape[1]
    dtype = x.dtype

    if segment_pos is None:
        segment_pos = jnp.tile(jnp.arange(T, dtype=jnp.int32)[None], (B, 1))
    reset = (segment_pos == 0).astype(jnp.float32)[..., None]        # [B, T, 1]

    if seq_chunk is None:
        seq_chunk = T if T <= 128 else 128
    Tc = seq_chunk
    Bt = batch_tile
    assert T % Tc == 0 and (Tc == T or Tc % 8 == 0), "seq_chunk must divide T (mult of 8)"
    assert B % Bt == 0, "batch_tile must divide B"

    grid = (B // Bt, T // Tc)            # (batch tiles [parallel], seq chunks [arbitrary])

    chunk_map = lambda b, c: (b, c, 0)
    const2 = lambda b, c: (0, 0)
    const3 = lambda b, c: (0, 0, 0)
    batch_map = lambda b, c: (b, 0, 0)   # cache outputs: resident across the chunk axis

    in_specs = [
        pl.BlockSpec((Bt, Tc, D), chunk_map),     # x
        pl.BlockSpec((Bt, Tc, 1), chunk_map),     # reset
        pl.BlockSpec((1, D), const2),             # tscale
        pl.BlockSpec((D, L), const2),             # wy
        pl.BlockSpec((1, L), const2),             # by
        pl.BlockSpec((D, L), const2),             # wx
        pl.BlockSpec((1, L), const2),             # bx
        pl.BlockSpec((K, L), const2),             # convw
        pl.BlockSpec((1, L), const2),             # convb
        pl.BlockSpec((1, L), const2),             # aparam
        pl.BlockSpec((H, hd, hd), const3),        # wi  (block-diagonal, per-head)
        pl.BlockSpec((1, L), const2),             # bi
        pl.BlockSpec((H, hd, hd), const3),        # wa
        pl.BlockSpec((1, L), const2),             # ba
        pl.BlockSpec((L, D), const2),             # wout
        pl.BlockSpec((1, D), const2),             # bout
        pl.BlockSpec((1, D), const2),             # cscale
        pl.BlockSpec((D, E), const2),             # wupg
        pl.BlockSpec((1, E), const2),             # bupg
        pl.BlockSpec((D, E), const2),             # wupl
        pl.BlockSpec((1, E), const2),             # bupl
        pl.BlockSpec((E, D), const2),             # wdown
        pl.BlockSpec((1, D), const2),             # bdown
    ]
    out_specs = (
        pl.BlockSpec((Bt, Tc, D), chunk_map),     # out (lane-dense, x.dtype)
        pl.BlockSpec((Bt, K - 1, L), batch_map),  # conv1d cache
        pl.BlockSpec((Bt, 1, L), batch_map),      # rg-lru cache
    )
    out_shapes = (
        jax.ShapeDtypeStruct((B, T, D), dtype),
        jax.ShapeDtypeStruct((B, K - 1, L), dtype),
        jax.ShapeDtypeStruct((B, 1, L), jnp.float32),
    )
    scratch_shapes = [
        pltpu.VMEM((Bt, K - 1, L), jnp.float32),  # carried conv tail
        pltpu.VMEM((Bt, 1, L), jnp.float32),      # carried RG-LRU hidden state
    ]

    kernel = functools.partial(_residual_block_kernel, compute_dtype=dtype)
    out, conv_cache, lru_cache = pl.pallas_call(
        kernel,
        out_shape=out_shapes,
        grid_spec=pltpu.PrefetchScalarGridSpec(
            num_scalar_prefetch=0,
            grid=grid,
            in_specs=in_specs,
            out_specs=out_specs,
            scratch_shapes=scratch_shapes,
        ),
        compiler_params=pltpu.CompilerParams(
            dimension_semantics=("parallel", "arbitrary"),
            vmem_limit_bytes=vmem_limit_bytes,
        ),
    )(
        x, reset,
        params["tscale"],
        params["wy"], params["by"], params["wx"], params["bx"],
        params["convw"], params["convb"],
        params["aparam"],
        params["wi"], params["bi"], params["wa"], params["ba"],
        params["wout"], params["bout"],
        params["cscale"],
        params["wupg"], params["bupg"], params["wupl"], params["bupl"],
        params["wdown"], params["bdown"],
    )
    new_cache = (conv_cache, lru_cache.reshape(B, L))
    return out, new_cache


# ----------------------------- params + pure-JAX reference ---------------------
def make_params(key, width, lru_width, expanded_width, num_heads, conv_k):
    D, L, E, H, K = width, lru_width, expanded_width, num_heads, conv_k
    hd = L // H
    ks = jax.random.split(key, 21)

    def nrm(k, shape, scale):
        return jax.random.normal(k, shape, jnp.float32) * scale

    return dict(
        tscale=nrm(ks[0], (1, D), 0.1),
        cscale=nrm(ks[1], (1, D), 0.1),
        wy=nrm(ks[2], (D, L), D ** -0.5), by=nrm(ks[3], (1, L), 0.02),
        wx=nrm(ks[4], (D, L), D ** -0.5), bx=nrm(ks[5], (1, L), 0.02),
        convw=nrm(ks[6], (K, L), K ** -0.5), convb=nrm(ks[7], (1, L), 0.02),
        aparam=jax.random.uniform(ks[8], (1, L), jnp.float32, 0.1, 1.0),
        wi=nrm(ks[9], (H, hd, hd), hd ** -0.5), bi=nrm(ks[10], (1, L), 0.02),
        wa=nrm(ks[11], (H, hd, hd), hd ** -0.5), ba=nrm(ks[12], (1, L), 0.02),
        wout=nrm(ks[13], (L, D), L ** -0.5), bout=nrm(ks[14], (1, D), 0.02),
        wupg=nrm(ks[15], (D, E), D ** -0.5), bupg=nrm(ks[16], (1, E), 0.02),
        wupl=nrm(ks[17], (D, E), D ** -0.5), bupl=nrm(ks[18], (1, E), 0.02),
        wdown=nrm(ks[19], (E, D), E ** -0.5), bdown=nrm(ks[20], (1, D), 0.02),
    )


def residual_block_reference(params, x, segment_pos):
    """Plain-JAX mirror of the kernel math (correctness check)."""
    reset = (segment_pos == 0).astype(jnp.float32)[..., None]
    B, T, D = x.shape
    K = params["convw"].shape[0]
    H, hd, _ = params["wi"].shape

    def rms(v, s):
        var = jnp.mean(v * v, axis=-1, keepdims=True)
        return v * jax.lax.rsqrt(var + EPS) * (1.0 + s)

    def heads(v, w, b):
        vh = v.reshape(B, T, H, hd)
        return jnp.einsum("bthd,hde->bthe", vh, w).reshape(B, T, H * hd) + b

    xn = rms(x, params["tscale"])
    yb = _gelu(xn @ params["wy"] + params["by"])
    xx = xn @ params["wx"] + params["bx"]
    xpad = jnp.pad(xx, ((0, 0), (K - 1, 0), (0, 0)))
    conv = params["convb"] + sum(params["convw"][i] * xpad[:, i:i + T, :] for i in range(K))
    gx = _sigmoid(heads(conv, params["wi"], params["bi"]))
    ga = _sigmoid(heads(conv, params["wa"], params["ba"]))
    log_a = -A_SCALE * ga * _softplus(params["aparam"])
    a = jnp.exp(log_a)
    mult = jnp.where(reset > 0.5, 1.0, jnp.sqrt(_one_minus_a_sq(log_a, a)))
    nx = conv * gx * mult
    h = jnp.zeros((B, xx.shape[-1]), jnp.float32)
    ys = []
    for t in range(T):
        h = a[:, t] * (h * (1.0 - reset[:, t])) + nx[:, t]
        ys.append(h)
    lru = jnp.stack(ys, axis=1)
    rec = (lru * yb) @ params["wout"] + params["bout"]
    x_res = rec + x
    xn2 = rms(x_res, params["cscale"])
    act = _gelu(xn2 @ params["wupg"] + params["bupg"]) * (xn2 @ params["wupl"] + params["bupl"])
    return act @ params["wdown"] + params["bdown"] + x_res


# TODO(synk): temporal_block_type == ATTENTION (LocalAttentionBlock) path not implemented;
#             only the HAWK RECURRENT path is kernelized.
# TODO(synk): dropout with p > 0 and decode-step cache *inputs* are not implemented
#             (p = 0.0 and cache=None, matching the default eval forward).

if __name__ == "__main__":
    B, T = 2, 16           # batch, sequence
    D = 128                # width
    E = 256                # mlp_expanded_width
    H = 4                  # num_heads
    L = 128                # lru_width (defaults to width)
    K = 4                  # conv1d_temporal_width

    key = jax.random.PRNGKey(0)
    pkey, xkey = jax.random.split(key)
    params = make_params(pkey, D, L, E, H, K)
    x = jax.random.normal(xkey, (B, T, D), jnp.float32)
    # two segments per row (restart at t=10) to exercise the RG-LRU reset path
    # in a non-first sequence chunk.
    segment_pos = jnp.concatenate(
        [jnp.arange(10, dtype=jnp.int32), jnp.arange(6, dtype=jnp.int32)])
    segment_pos = jnp.tile(segment_pos[None], (B, 1))

    out, (conv_cache, lru_cache) = residual_block_forward(
        params, x, segment_pos, seq_chunk=8, batch_tile=1)
    out = jax.block_until_ready(out)

    ref = residual_block_reference(params, x, segment_pos)
    np.testing.assert_allclose(np.asarray(out), np.asarray(ref), rtol=5e-3, atol=5e-3)
    print("KERNEL_OK")
</pallas_src>

<mosaic_0001>
module attributes {stable_mosaic.version = 11 : i64} {
  func.func @_residual_block_kernel(%arg0: i32, %arg1: i32, %arg2: memref<1x8x128xf32, #tpu.memory_space<vmem>>, %arg3: memref<1x8x1xf32, #tpu.memory_space<vmem>>, %arg4: memref<1x128xf32, #tpu.memory_space<vmem>>, %arg5: memref<128x128xf32, #tpu.memory_space<vmem>>, %arg6: memref<1x128xf32, #tpu.memory_space<vmem>>, %arg7: memref<128x128xf32, #tpu.memory_space<vmem>>, %arg8: memref<1x128xf32, #tpu.memory_space<vmem>>, %arg9: memref<4x128xf32, #tpu.memory_space<vmem>>, %arg10: memref<1x128xf32, #tpu.memory_space<vmem>>, %arg11: memref<1x128xf32, #tpu.memory_space<vmem>>, %arg12: memref<4x32x32xf32, #tpu.memory_space<vmem>>, %arg13: memref<1x128xf32, #tpu.memory_space<vmem>>, %arg14: memref<4x32x32xf32, #tpu.memory_space<vmem>>, %arg15: memref<1x128xf32, #tpu.memory_space<vmem>>, %arg16: memref<128x128xf32, #tpu.memory_space<vmem>>, %arg17: memref<1x128xf32, #tpu.memory_space<vmem>>, %arg18: memref<1x128xf32, #tpu.memory_space<vmem>>, %arg19: memref<128x256xf32, #tpu.memory_space<vmem>>, %arg20: memref<1x256xf32, #tpu.memory_space<vmem>>, %arg21: memref<128x256xf32, #tpu.memory_space<vmem>>, %arg22: memref<1x256xf32, #tpu.memory_space<vmem>>, %arg23: memref<256x128xf32, #tpu.memory_space<vmem>>, %arg24: memref<1x128xf32, #tpu.memory_space<vmem>>, %arg25: memref<1x8x128xf32, #tpu.memory_space<vmem>>, %arg26: memref<1x3x128xf32, #tpu.memory_space<vmem>>, %arg27: memref<1x1x128xf32, #tpu.memory_space<vmem>>, %arg28: memref<1x3x128xf32, #tpu.memory_space<vmem>>, %arg29: memref<1x1x128xf32, #tpu.memory_space<vmem>>) attributes {dimension_semantics = [#tpu.dimension_semantics<parallel>, #tpu.dimension_semantics<arbitrary>], iteration_bounds = array<i64: 2, 2>, scalar_prefetch = 0 : i64, scratch_operands = 2 : i64, tpu.core_type = #tpu.core_type<tc>, window_params = [{transform_indices = @transform_0, window_bounds = array<i64: 1, 8, 128>}, {transform_indices = @transform_1, window_bounds = array<i64: 1, 8, 1>}, {pipeline_mode = #tpu.pipeline_mode<synchronous>, transform_indices = @transform_2, window_bounds = array<i64: 1, 128>}, {pipeline_mode = #tpu.pipeline_mode<synchronous>, transform_indices = @transform_3, window_bounds = array<i64: 128, 128>}, {pipeline_mode = #tpu.pipeline_mode<synchronous>, transform_indices = @transform_4, window_bounds = array<i64: 1, 128>}, {pipeline_mode = #tpu.pipeline_mode<synchronous>, transform_indices = @transform_5, window_bounds = array<i64: 128, 128>}, {pipeline_mode = #tpu.pipeline_mode<synchronous>, transform_indices = @transform_6, window_bounds = array<i64: 1, 128>}, {pipeline_mode = #tpu.pipeline_mode<synchronous>, transform_indices = @transform_7, window_bounds = array<i64: 4, 128>}, {pipeline_mode = #tpu.pipeline_mode<synchronous>, transform_indices = @transform_8, window_bounds = array<i64: 1, 128>}, {pipeline_mode = #tpu.pipeline_mode<synchronous>, transform_indices = @transform_9, window_bounds = array<i64: 1, 128>}, {pipeline_mode = #tpu.pipeline_mode<synchronous>, transform_indices = @transform_10, window_bounds = array<i64: 4, 32, 32>}, {pipeline_mode = #tpu.pipeline_mode<synchronous>, transform_indices = @transform_11, window_bounds = array<i64: 1, 128>}, {pipeline_mode = #tpu.pipeline_mode<synchronous>, transform_indices = @transform_12, window_bounds = array<i64: 4, 32, 32>}, {pipeline_mode = #tpu.pipeline_mode<synchronous>, transform_indices = @transform_13, window_bounds = array<i64: 1, 128>}, {pipeline_mode = #tpu.pipeline_mode<synchronous>, transform_indices = @transform_14, window_bounds = array<i64: 128, 128>}, {pipeline_mode = #tpu.pipeline_mode<synchronous>, transform_indices = @transform_15, window_bounds = array<i64: 1, 128>}, {pipeline_mode = #tpu.pipeline_mode<synchronous>, transform_indices = @transform_16, window_bounds = array<i64: 1, 128>}, {pipeline_mode = #tpu.pipeline_mode<synchronous>, transform_indices = @transform_17, window_bounds = array<i64: 128, 256>}, {pipeline_mode = #tpu.pipeline_mode<synchronous>, transform_indices = @transform_18, window_bounds = array<i64: 1, 256>}, {pipeline_mode = #tpu.pipeline_mode<synchronous>, transform_indices = @transform_19, window_bounds = array<i64: 128, 256>}, {pipeline_mode = #tpu.pipeline_mode<synchronous>, transform_indices = @transform_20, window_bounds = array<i64: 1, 256>}, {pipeline_mode = #tpu.pipeline_mode<synchronous>, transform_indices = @transform_21, window_bounds = array<i64: 256, 128>}, {pipeline_mode = #tpu.pipeline_mode<synchronous>, transform_indices = @transform_22, window_bounds = array<i64: 1, 128>}, {transform_indices = @transform_23, window_bounds = array<i64: 1, 8, 128>}, {transform_indices = @transform_24, window_bounds = array<i64: 1, 3, 128>}, {transform_indices = @transform_25, window_bounds = array<i64: 1, 1, 128>}]} {
    %c0 = arith.constant 0 : index
    %c0_0 = arith.constant 0 : index
    %c0_1 = arith.constant 0 : index
    %0 = vector.load %arg2[%c0, %c0_0, %c0_1] : memref<1x8x128xf32, #tpu.memory_space<vmem>>, vector<1x8x128xf32>
    %c0_i32 = arith.constant 0 : i32
    %1 = arith.cmpi eq, %arg1, %c0_i32 : i32
    %2 = arith.extui %1 : i1 to i32
    %c0_i32_2 = arith.constant 0 : i32
    %3 = arith.cmpi ne, %2, %c0_i32_2 : i32
    scf.if %3 {
      %cst_136 = arith.constant 0.000000e+00 : f32
      %318 = vector.broadcast %cst_136 : f32 to vector<1x3x128xf32>
      %c0_137 = arith.constant 0 : index
      %c0_138 = arith.constant 0 : index
      %c0_139 = arith.constant 0 : index
      %319 = vector.load %arg28[%c0_137, %c0_138, %c0_139] : memref<1x3x128xf32, #tpu.memory_space<vmem>>, vector<1x3x128xf32>
      tpu.vector_store %arg28[%c0_137, %c0_138, %c0_139], %318 {strides = array<i32>} : memref<1x3x128xf32, #tpu.memory_space<vmem>>, vector<1x3x128xf32>,
      %cst_140 = arith.constant 0.000000e+00 : f32
      %320 = vector.broadcast %cst_140 : f32 to vector<1x1x128xf32>
      %c0_141 = arith.constant 0 : index
      %c0_142 = arith.constant 0 : index
      %c0_143 = arith.constant 0 : index
      %321 = vector.load %arg29[%c0_141, %c0_142, %c0_143] : memref<1x1x128xf32, #tpu.memory_space<vmem>>, vector<1x1x128xf32>
      tpu.vector_store %arg29[%c0_141, %c0_142, %c0_143], %320 {strides = array<i32>} : memref<1x1x128xf32, #tpu.memory_space<vmem>>, vector<1x1x128xf32>,
    } else {
    }
    %c0_3 = arith.constant 0 : index
    %c0_4 = arith.constant 0 : index
    %c0_5 = arith.constant 0 : index
    %4 = vector.load %arg3[%c0_3, %c0_4, %c0_5] : memref<1x8x1xf32, #tpu.memory_space<vmem>>, vector<1x8x1xf32>
    %5 = arith.mulf %0, %0 : vector<1x8x128xf32>
    %cst = arith.constant dense<0.000000e+00> : vector<1x8xf32>
    %6 = vector.multi_reduction <add>, %5, %cst [2] : vector<1x8x128xf32> to vector<1x8xf32>
    %7 = vector.shape_cast %6 : vector<1x8xf32> to vector<1x8x1xf32>
    %cst_6 = arith.constant 1.280000e+02 : f32
    %8 = vector.broadcast %cst_6 : f32 to vector<1x8x1xf32>
    %9 = arith.divf %7, %8 : vector<1x8x1xf32>
    %cst_7 = arith.constant 9.99999997E-7 : f32
    %10 = vector.broadcast %cst_7 : f32 to vector<1x8x1xf32>
    %11 = arith.addf %9, %10 : vector<1x8x1xf32>
    %12 = math.rsqrt %11 : vector<1x8x1xf32>
    %13 = vector.broadcast %12 : vector<1x8x1xf32> to vector<1x8x128xf32>
    %14 = arith.mulf %0, %13 : vector<1x8x128xf32>
    %c0_8 = arith.constant 0 : index
    %c0_9 = arith.constant 0 : index
    %15 = vector.load %arg4[%c0_8, %c0_9] : memref<1x128xf32, #tpu.memory_space<vmem>>, vector<1x128xf32>
    %cst_10 = arith.constant 1.000000e+00 : f32
    %16 = vector.broadcast %cst_10 : f32 to vector<1x128xf32>
    %17 = arith.addf %16, %15 : vector<1x128xf32>
    %18 = vector.shape_cast %17 : vector<1x128xf32> to vector<1x1x128xf32>
    %19 = vector.broadcast %18 : vector<1x1x128xf32> to vector<1x8x128xf32>
    %20 = arith.mulf %14, %19 : vector<1x8x128xf32>
    %c0_11 = arith.constant 0 : index
    %c0_12 = arith.constant 0 : index
    %21 = vector.load %arg5[%c0_11, %c0_12] : memref<128x128xf32, #tpu.memory_space<vmem>>, vector<128x128xf32>
    %22 = vector.shape_cast %20 : vector<1x8x128xf32> to vector<8x128xf32>
    %cst_13 = arith.constant dense<0.000000e+00> : vector<8x128xf32>
    %23 = tpu.matmul %22, %21, %cst_13 {dimension_numbers = #tpu.dot_dimension_numbers<[1], [0], [0], [1], [0, 0, 1, 1], [], []>} : vector<8x128xf32>, vector<128x128xf32>, vector<8x128xf32> -> vector<8x128xf32>
    %24 = vector.shape_cast %23 : vector<8x128xf32> to vector<1x8x128xf32>
    %c0_14 = arith.constant 0 : index
    %c0_15 = arith.constant 0 : index
    %25 = vector.load %arg6[%c0_14, %c0_15] : memref<1x128xf32, #tpu.memory_space<vmem>>, vector<1x128xf32>
    %26 = vector.shape_cast %25 : vector<1x128xf32> to vector<1x1x128xf32>
    %27 = vector.broadcast %26 : vector<1x1x128xf32> to vector<1x8x128xf32>
    %28 = arith.addf %24, %27 : vector<1x8x128xf32>
    %cst_16 = arith.constant 5.000000e-01 : f32
    %29 = vector.broadcast %cst_16 : f32 to vector<1x8x128xf32>
    %30 = arith.mulf %29, %28 : vector<1x8x128xf32>
    %cst_17 = arith.constant 4.471500e-02 : f32
    %31 = vector.broadcast %cst_17 : f32 to vector<1x8x128xf32>
    %32 = arith.mulf %31, %28 : vector<1x8x128xf32>
    %33 = arith.mulf %32, %28 : vector<1x8x128xf32>
    %34 = arith.mulf %33, %28 : vector<1x8x128xf32>
    %35 = arith.addf %28, %34 : vector<1x8x128xf32>
    %cst_18 = arith.constant 0.797884583 : f32
    %36 = vector.broadcast %cst_18 : f32 to vector<1x8x128xf32>
    %37 = arith.mulf %36, %35 : vector<1x8x128xf32>
    %38 = math.tanh %37 : vector<1x8x128xf32>
    %cst_19 = arith.constant 1.000000e+00 : f32
    %39 = vector.broadcast %cst_19 : f32 to vector<1x8x128xf32>
    %40 = arith.addf %39, %38 : vector<1x8x128xf32>
    %41 = arith.mulf %30, %40 : vector<1x8x128xf32>
    %c0_20 = arith.constant 0 : index
    %c0_21 = arith.constant 0 : index
    %42 = vector.load %arg7[%c0_20, %c0_21] : memref<128x128xf32, #tpu.memory_space<vmem>>, vector<128x128xf32>
    %43 = vector.shape_cast %20 : vector<1x8x128xf32> to vector<8x128xf32>
    %cst_22 = arith.constant dense<0.000000e+00> : vector<8x128xf32>
    %44 = tpu.matmul %43, %42, %cst_22 {dimension_numbers = #tpu.dot_dimension_numbers<[1], [0], [0], [1], [0, 0, 1, 1], [], []>} : vector<8x128xf32>, vector<128x128xf32>, vector<8x128xf32> -> vector<8x128xf32>
    %45 = vector.shape_cast %44 : vector<8x128xf32> to vector<1x8x128xf32>
    %c0_23 = arith.constant 0 : index
    %c0_24 = arith.constant 0 : index
    %46 = vector.load %arg8[%c0_23, %c0_24] : memref<1x128xf32, #tpu.memory_space<vmem>>, vector<1x128xf32>
    %47 = vector.shape_cast %46 : vector<1x128xf32> to vector<1x1x128xf32>
    %48 = vector.broadcast %47 : vector<1x1x128xf32> to vector<1x8x128xf32>
    %49 = arith.addf %45, %48 : vector<1x8x128xf32>
    %c0_25 = arith.constant 0 : index
    %c0_26 = arith.constant 0 : index
    %c0_27 = arith.constant 0 : index
    %50 = vector.load %arg28[%c0_25, %c0_26, %c0_27] : memref<1x3x128xf32, #tpu.memory_space<vmem>>, vector<1x3x128xf32>
    %51 = tpu.concatenate %50, %49 in 1 : vector<1x3x128xf32>, vector<1x8x128xf32> -> vector<1x11x128xf32>
    %c0_28 = arith.constant 0 : index
    %c0_29 = arith.constant 0 : index
    %52 = vector.load %arg9[%c0_28, %c0_29] : memref<4x128xf32, #tpu.memory_space<vmem>>, vector<4x128xf32>
    %c0_30 = arith.constant 0 : index
    %c0_31 = arith.constant 0 : index
    %53 = vector.load %arg10[%c0_30, %c0_31] : memref<1x128xf32, #tpu.memory_space<vmem>>, vector<1x128xf32>
    %54 = vector.extract_strided_slice %52 {offsets = [0, 0], sizes = [1, 128], strides = [1, 1]} : vector<4x128xf32> to vector<1x128xf32>
    %55 = vector.extract_strided_slice %51 {offsets = [0, 0, 0], sizes = [1, 8, 128], strides = [1, 1, 1]} : vector<1x11x128xf32> to vector<1x8x128xf32>
    %56 = vector.shape_cast %54 : vector<1x128xf32> to vector<1x1x128xf32>
    %57 = vector.broadcast %56 : vector<1x1x128xf32> to vector<1x8x128xf32>
    %58 = arith.mulf %57, %55 : vector<1x8x128xf32>
    %59 = vector.shape_cast %53 : vector<1x128xf32> to vector<1x1x128xf32>
    %60 = vector.broadcast %59 : vector<1x1x128xf32> to vector<1x8x128xf32>
    %61 = arith.addf %60, %58 : vector<1x8x128xf32>
    %62 = vector.extract_strided_slice %52 {offsets = [1, 0], sizes = [1, 128], strides = [1, 1]} : vector<4x128xf32> to vector<1x128xf32>
    %63 = vector.extract_strided_slice %51 {offsets = [0, 1, 0], sizes = [1, 8, 128], strides = [1, 1, 1]} : vector<1x11x128xf32> to vector<1x8x128xf32>
    %64 = vector.shape_cast %62 : vector<1x128xf32> to vector<1x1x128xf32>
    %65 = vector.broadcast %64 : vector<1x1x128xf32> to vector<1x8x128xf32>
    %66 = arith.mulf %65, %63 : vector<1x8x128xf32>
    %67 = arith.addf %61, %66 : vector<1x8x128xf32>
    %68 = vector.extract_strided_slice %52 {offsets = [2, 0], sizes = [1, 128], strides = [1, 1]} : vector<4x128xf32> to vector<1x128xf32>
    %69 = vector.extract_strided_slice %51 {offsets = [0, 2, 0], sizes = [1, 8, 128], strides = [1, 1, 1]} : vector<1x11x128xf32> to vector<1x8x128xf32>
    %70 = vector.shape_cast %68 : vector<1x128xf32> to vector<1x1x128xf32>
    %71 = vector.broadcast %70 : vector<1x1x128xf32> to vector<1x8x128xf32>
    %72 = arith.mulf %71, %69 : vector<1x8x128xf32>
    %73 = arith.addf %67, %72 : vector<1x8x128xf32>
    %74 = vector.extract_strided_slice %52 {offsets = [3, 0], sizes = [1, 128], strides = [1, 1]} : vector<4x128xf32> to vector<1x128xf32>
    %75 = vector.extract_strided_slice %51 {offsets = [0, 3, 0], sizes = [1, 8, 128], strides = [1, 1, 1]} : vector<1x11x128xf32> to vector<1x8x128xf32>
    %76 = vector.shape_cast %74 : vector<1x128xf32> to vector<1x1x128xf32>
    %77 = vector.broadcast %76 : vector<1x1x128xf32> to vector<1x8x128xf32>
    %78 = arith.mulf %77, %75 : vector<1x8x128xf32>
    %79 = arith.addf %73, %78 : vector<1x8x128xf32>
    %80 = vector.extract_strided_slice %51 {offsets = [0, 8, 0], sizes = [1, 3, 128], strides = [1, 1, 1]} : vector<1x11x128xf32> to vector<1x3x128xf32>
    %c0_32 = arith.constant 0 : index
    %c0_33 = arith.constant 0 : index
    %c0_34 = arith.constant 0 : index
    %81 = vector.load %arg28[%c0_32, %c0_33, %c0_34] : memref<1x3x128xf32, #tpu.memory_space<vmem>>, vector<1x3x128xf32>
    tpu.vector_store %arg28[%c0_32, %c0_33, %c0_34], %80 {strides = array<i32>} : memref<1x3x128xf32, #tpu.memory_space<vmem>>, vector<1x3x128xf32>,
    %c0_35 = arith.constant 0 : index
    %c0_36 = arith.constant 0 : index
    %c0_37 = arith.constant 0 : index
    %82 = vector.load %arg26[%c0_35, %c0_36, %c0_37] : memref<1x3x128xf32, #tpu.memory_space<vmem>>, vector<1x3x128xf32>
    tpu.vector_store %arg26[%c0_35, %c0_36, %c0_37], %80 {strides = array<i32>} : memref<1x3x128xf32, #tpu.memory_space<vmem>>, vector<1x3x128xf32>,
    %83 = vector.shape_cast %79 : vector<1x8x128xf32> to vector<8x128xf32>
    %84 = vector.extract_strided_slice %83 {offsets = [0, 0], sizes = [8, 32], strides = [1, 1]} : vector<8x128xf32> to vector<8x32xf32>
    %c0_38 = arith.constant 0 : index
    %c0_39 = arith.constant 0 : index
    %c0_40 = arith.constant 0 : index
    %85 = vector.load %arg12[%c0_38, %c0_39, %c0_40] : memref<4x32x32xf32, #tpu.memory_space<vmem>>, vector<1x32x32xf32>
    %86 = vector.shape_cast %85 : vector<1x32x32xf32> to vector<32x32xf32>
    %cst_41 = arith.constant dense<0.000000e+00> : vector<8x32xf32>
    %87 = tpu.matmul %84, %86, %cst_41 {dimension_numbers = #tpu.dot_dimension_numbers<[1], [0], [0], [1], [0, 0, 1, 1], [], []>} : vector<8x32xf32>, vector<32x32xf32>, vector<8x32xf32> -> vector<8x32xf32>
    %88 = vector.extract_strided_slice %83 {offsets = [0, 32], sizes = [8, 32], strides = [1, 1]} : vector<8x128xf32> to vector<8x32xf32>
    %c1 = arith.constant 1 : index
    %c0_42 = arith.constant 0 : index
    %c0_43 = arith.constant 0 : index
    %89 = vector.load %arg12[%c1, %c0_42, %c0_43] : memref<4x32x32xf32, #tpu.memory_space<vmem>>, vector<1x32x32xf32>
    %90 = vector.shape_cast %89 : vector<1x32x32xf32> to vector<32x32xf32>
    %cst_44 = arith.constant dense<0.000000e+00> : vector<8x32xf32>
    %91 = tpu.matmul %88, %90, %cst_44 {dimension_numbers = #tpu.dot_dimension_numbers<[1], [0], [0], [1], [0, 0, 1, 1], [], []>} : vector<8x32xf32>, vector<32x32xf32>, vector<8x32xf32> -> vector<8x32xf32>
    %92 = vector.extract_strided_slice %83 {offsets = [0, 64], sizes = [8, 32], strides = [1, 1]} : vector<8x128xf32> to vector<8x32xf32>
    %c2 = arith.constant 2 : index
    %c0_45 = arith.constant 0 : index
    %c0_46 = arith.constant 0 : index
    %93 = vector.load %arg12[%c2, %c0_45, %c0_46] : memref<4x32x32xf32, #tpu.memory_space<vmem>>, vector<1x32x32xf32>
    %94 = vector.shape_cast %93 : vector<1x32x32xf32> to vector<32x32xf32>
    %cst_47 = arith.constant dense<0.000000e+00> : vector<8x32xf32>
    %95 = tpu.matmul %92, %94, %cst_47 {dimension_numbers = #tpu.dot_dimension_numbers<[1], [0], [0], [1], [0, 0, 1, 1], [], []>} : vector<8x32xf32>, vector<32x32xf32>, vector<8x32xf32> -> vector<8x32xf32>
    %96 = vector.extract_strided_slice %83 {offsets = [0, 96], sizes = [8, 32], strides = [1, 1]} : vector<8x128xf32> to vector<8x32xf32>
    %c3 = arith.constant 3 : index
    %c0_48 = arith.constant 0 : index
    %c0_49 = arith.constant 0 : index
    %97 = vector.load %arg12[%c3, %c0_48, %c0_49] : memref<4x32x32xf32, #tpu.memory_space<vmem>>, vector<1x32x32xf32>
    %98 = vector.shape_cast %97 : vector<1x32x32xf32> to vector<32x32xf32>
    %cst_50 = arith.constant dense<0.000000e+00> : vector<8x32xf32>
    %99 = tpu.matmul %96, %98, %cst_50 {dimension_numbers = #tpu.dot_dimension_numbers<[1], [0], [0], [1], [0, 0, 1, 1], [], []>} : vector<8x32xf32>, vector<32x32xf32>, vector<8x32xf32> -> vector<8x32xf32>
    %100 = tpu.concatenate %87, %91, %95, %99 in 1 : vector<8x32xf32>, vector<8x32xf32>, vector<8x32xf32>, vector<8x32xf32> -> vector<8x128xf32>
    %101 = vector.shape_cast %100 : vector<8x128xf32> to vector<1x8x128xf32>
    %c0_51 = arith.constant 0 : index
    %c0_52 = arith.constant 0 : index
    %102 = vector.load %arg13[%c0_51, %c0_52] : memref<1x128xf32, #tpu.memory_space<vmem>>, vector<1x128xf32>
    %103 = vector.shape_cast %102 : vector<1x128xf32> to vector<1x1x128xf32>
    %104 = vector.broadcast %103 : vector<1x1x128xf32> to vector<1x8x128xf32>
    %105 = arith.addf %101, %104 : vector<1x8x128xf32>
    %cst_53 = arith.constant 5.000000e-01 : f32
    %106 = vector.broadcast %cst_53 : f32 to vector<1x8x128xf32>
    %107 = arith.mulf %106, %105 : vector<1x8x128xf32>
    %108 = math.tanh %107 : vector<1x8x128xf32>
    %cst_54 = arith.constant 1.000000e+00 : f32
    %109 = vector.broadcast %cst_54 : f32 to vector<1x8x128xf32>
    %110 = arith.addf %108, %109 : vector<1x8x128xf32>
    %cst_55 = arith.constant 5.000000e-01 : f32
    %111 = vector.broadcast %cst_55 : f32 to vector<1x8x128xf32>
    %112 = arith.mulf %111, %110 : vector<1x8x128xf32>
    %113 = vector.shape_cast %79 : vector<1x8x128xf32> to vector<8x128xf32>
    %114 = vector.extract_strided_slice %113 {offsets = [0, 0], sizes = [8, 32], strides = [1, 1]} : vector<8x128xf32> to vector<8x32xf32>
    %c0_56 = arith.constant 0 : index
    %c0_57 = arith.constant 0 : index
    %c0_58 = arith.constant 0 : index
    %115 = vector.load %arg14[%c0_56, %c0_57, %c0_58] : memref<4x32x32xf32, #tpu.memory_space<vmem>>, vector<1x32x32xf32>
    %116 = vector.shape_cast %115 : vector<1x32x32xf32> to vector<32x32xf32>
    %cst_59 = arith.constant dense<0.000000e+00> : vector<8x32xf32>
    %117 = tpu.matmul %114, %116, %cst_59 {dimension_numbers = #tpu.dot_dimension_numbers<[1], [0], [0], [1], [0, 0, 1, 1], [], []>} : vector<8x32xf32>, vector<32x32xf32>, vector<8x32xf32> -> vector<8x32xf32>
    %118 = vector.extract_strided_slice %113 {offsets = [0, 32], sizes = [8, 32], strides = [1, 1]} : vector<8x128xf32> to vector<8x32xf32>
    %c1_60 = arith.constant 1 : index
    %c0_61 = arith.constant 0 : index
    %c0_62 = arith.constant 0 : index
    %119 = vector.load %arg14[%c1_60, %c0_61, %c0_62] : memref<4x32x32xf32, #tpu.memory_space<vmem>>, vector<1x32x32xf32>
    %120 = vector.shape_cast %119 : vector<1x32x32xf32> to vector<32x32xf32>
    %cst_63 = arith.constant dense<0.000000e+00> : vector<8x32xf32>
    %121 = tpu.matmul %118, %120, %cst_63 {dimension_numbers = #tpu.dot_dimension_numbers<[1], [0], [0], [1], [0, 0, 1, 1], [], []>} : vector<8x32xf32>, vector<32x32xf32>, vector<8x32xf32> -> vector<8x32xf32>
    %122 = vector.extract_strided_slice %113 {offsets = [0, 64], sizes = [8, 32], strides = [1, 1]} : vector<8x128xf32> to vector<8x32xf32>
    %c2_64 = arith.constant 2 : index
    %c0_65 = arith.constant 0 : index
    %c0_66 = arith.constant 0 : index
    %123 = vector.load %arg14[%c2_64, %c0_65, %c0_66] : memref<4x32x32xf32, #tpu.memory_space<vmem>>, vector<1x32x32xf32>
    %124 = vector.shape_cast %123 : vector<1x32x32xf32> to vector<32x32xf32>
    %cst_67 = arith.constant dense<0.000000e+00> : vector<8x32xf32>
    %125 = tpu.matmul %122, %124, %cst_67 {dimension_numbers = #tpu.dot_dimension_numbers<[1], [0], [0], [1], [0, 0, 1, 1], [], []>} : vector<8x32xf32>, vector<32x32xf32>, vector<8x32xf32> -> vector<8x32xf32>
    %126 = vector.extract_strided_slice %113 {offsets = [0, 96], sizes = [8, 32], strides = [1, 1]} : vector<8x128xf32> to vector<8x32xf32>
    %c3_68 = arith.constant 3 : index
    %c0_69 = arith.constant 0 : index
    %c0_70 = arith.constant 0 : index
    %127 = vector.load %arg14[%c3_68, %c0_69, %c0_70] : memref<4x32x32xf32, #tpu.memory_space<vmem>>, vector<1x32x32xf32>
    %128 = vector.shape_cast %127 : vector<1x32x32xf32> to vector<32x32xf32>
    %cst_71 = arith.constant dense<0.000000e+00> : vector<8x32xf32>
    %129 = tpu.matmul %126, %128, %cst_71 {dimension_numbers = #tpu.dot_dimension_numbers<[1], [0], [0], [1], [0, 0, 1, 1], [], []>} : vector<8x32xf32>, vector<32x32xf32>, vector<8x32xf32> -> vector<8x32xf32>
    %130 = tpu.concatenate %117, %121, %125, %129 in 1 : vector<8x32xf32>, vector<8x32xf32>, vector<8x32xf32>, vector<8x32xf32> -> vector<8x128xf32>
    %131 = vector.shape_cast %130 : vector<8x128xf32> to vector<1x8x128xf32>
    %c0_72 = arith.constant 0 : index
    %c0_73 = arith.constant 0 : index
    %132 = vector.load %arg15[%c0_72, %c0_73] : memref<1x128xf32, #tpu.memory_space<vmem>>, vector<1x128xf32>
    %133 = vector.shape_cast %132 : vector<1x128xf32> to vector<1x1x128xf32>
    %134 = vector.broadcast %133 : vector<1x1x128xf32> to vector<1x8x128xf32>
    %135 = arith.addf %131, %134 : vector<1x8x128xf32>
    %cst_74 = arith.constant 5.000000e-01 : f32
    %136 = vector.broadcast %cst_74 : f32 to vector<1x8x128xf32>
    %137 = arith.mulf %136, %135 : vector<1x8x128xf32>
    %138 = math.tanh %137 : vector<1x8x128xf32>
    %cst_75 = arith.constant 1.000000e+00 : f32
    %139 = vector.broadcast %cst_75 : f32 to vector<1x8x128xf32>
    %140 = arith.addf %138, %139 : vector<1x8x128xf32>
    %cst_76 = arith.constant 5.000000e-01 : f32
    %141 = vector.broadcast %cst_76 : f32 to vector<1x8x128xf32>
    %142 = arith.mulf %141, %140 : vector<1x8x128xf32>
    %cst_77 = arith.constant -8.000000e+00 : f32
    %143 = vector.broadcast %cst_77 : f32 to vector<1x8x128xf32>
    %144 = arith.mulf %143, %142 : vector<1x8x128xf32>
    %c0_78 = arith.constant 0 : index
    %c0_79 = arith.constant 0 : index
    %145 = vector.load %arg11[%c0_78, %c0_79] : memref<1x128xf32, #tpu.memory_space<vmem>>, vector<1x128xf32>
    %cst_80 = arith.constant 0.000000e+00 : f32
    %146 = vector.broadcast %cst_80 : f32 to vector<1x128xf32>
    %147 = arith.maximumf %145, %146 : vector<1x128xf32>
    %148 = math.absf %145 : vector<1x128xf32>
    %cst_81 = arith.constant 0.000000e+00 : f32
    %149 = vector.broadcast %cst_81 : f32 to vector<1x128xf32>
    %150 = arith.subf %149, %148 : vector<1x128xf32>
    %151 = math.exp %150 : vector<1x128xf32>
    %cst_82 = arith.constant 1.000000e+00 : f32
    %152 = vector.broadcast %cst_82 : f32 to vector<1x128xf32>
    %153 = arith.addf %152, %151 : vector<1x128xf32>
    %154 = math.log %153 : vector<1x128xf32>
    %155 = arith.addf %147, %154 : vector<1x128xf32>
    %156 = vector.shape_cast %155 : vector<1x128xf32> to vector<1x1x128xf32>
    %157 = vector.broadcast %156 : vector<1x1x128xf32> to vector<1x8x128xf32>
    %158 = arith.mulf %144, %157 : vector<1x8x128xf32>
    %159 = math.exp %158 : vector<1x8x128xf32>
    %cst_83 = arith.constant 0.000000e+00 : f32
    %160 = vector.broadcast %cst_83 : f32 to vector<1x8x128xf32>
    %161 = arith.subf %160, %158 : vector<1x8x128xf32>
    %162 = math.tanh %161 : vector<1x8x128xf32>
    %163 = arith.mulf %159, %159 : vector<1x8x128xf32>
    %cst_84 = arith.constant 1.000000e+00 : f32
    %164 = vector.broadcast %cst_84 : f32 to vector<1x8x128xf32>
    %165 = arith.addf %164, %163 : vector<1x8x128xf32>
    %166 = arith.mulf %162, %165 : vector<1x8x128xf32>
    %167 = math.sqrt %166 : vector<1x8x128xf32>
    %cst_85 = arith.constant 1.000000e+00 : f32
    %168 = vector.broadcast %cst_85 : f32 to vector<1x8x1xf32>
    %169 = arith.subf %168, %4 : vector<1x8x1xf32>
    %170 = vector.broadcast %169 : vector<1x8x1xf32> to vector<1x8x128xf32>
    %171 = arith.mulf %170, %167 : vector<1x8x128xf32>
    %172 = vector.broadcast %4 : vector<1x8x1xf32> to vector<1x8x128xf32>
    %173 = arith.addf %172, %171 : vector<1x8x128xf32>
    %174 = arith.mulf %79, %112 : vector<1x8x128xf32>
    %175 = arith.mulf %174, %173 : vector<1x8x128xf32>
    %c0_86 = arith.constant 0 : index
    %c0_87 = arith.constant 0 : index
    %c0_88 = arith.constant 0 : index
    %176 = vector.load %arg29[%c0_86, %c0_87, %c0_88] : memref<1x1x128xf32, #tpu.memory_space<vmem>>, vector<1x1x128xf32>
    %177 = vector.extract_strided_slice %159 {offsets = [0, 0, 0], sizes = [1, 1, 128], strides = [1, 1, 1]} : vector<1x8x128xf32> to vector<1x1x128xf32>
    %178 = vector.extract_strided_slice %4 {offsets = [0, 0, 0], sizes = [1, 1, 1], strides = [1, 1, 1]} : vector<1x8x1xf32> to vector<1x1x1xf32>
    %cst_89 = arith.constant 1.000000e+00 : f32
    %179 = vector.broadcast %cst_89 : f32 to vector<1x1x1xf32>
    %180 = arith.subf %179, %178 : vector<1x1x1xf32>
    %181 = vector.broadcast %180 : vector<1x1x1xf32> to vector<1x1x128xf32>
    %182 = arith.mulf %176, %181 : vector<1x1x128xf32>
    %183 = arith.mulf %177, %182 : vector<1x1x128xf32>
    %184 = vector.extract_strided_slice %175 {offsets = [0, 0, 0], sizes = [1, 1, 128], strides = [1, 1, 1]} : vector<1x8x128xf32> to vector<1x1x128xf32>
    %185 = arith.addf %183, %184 : vector<1x1x128xf32>
    %186 = vector.extract_strided_slice %159 {offsets = [0, 1, 0], sizes = [1, 1, 128], strides = [1, 1, 1]} : vector<1x8x128xf32> to vector<1x1x128xf32>
    %187 = vector.extract_strided_slice %4 {offsets = [0, 1, 0], sizes = [1, 1, 1], strides = [1, 1, 1]} : vector<1x8x1xf32> to vector<1x1x1xf32>
    %cst_90 = arith.constant 1.000000e+00 : f32
    %188 = vector.broadcast %cst_90 : f32 to vector<1x1x1xf32>
    %189 = arith.subf %188, %187 : vector<1x1x1xf32>
    %190 = vector.broadcast %189 : vector<1x1x1xf32> to vector<1x1x128xf32>
    %191 = arith.mulf %185, %190 : vector<1x1x128xf32>
    %192 = arith.mulf %186, %191 : vector<1x1x128xf32>
    %193 = vector.extract_strided_slice %175 {offsets = [0, 1, 0], sizes = [1, 1, 128], strides = [1, 1, 1]} : vector<1x8x128xf32> to vector<1x1x128xf32>
    %194 = arith.addf %192, %193 : vector<1x1x128xf32>
    %195 = vector.extract_strided_slice %159 {offsets = [0, 2, 0], sizes = [1, 1, 128], strides = [1, 1, 1]} : vector<1x8x128xf32> to vector<1x1x128xf32>
    %196 = vector.extract_strided_slice %4 {offsets = [0, 2, 0], sizes = [1, 1, 1], strides = [1, 1, 1]} : vector<1x8x1xf32> to vector<1x1x1xf32>
    %cst_91 = arith.constant 1.000000e+00 : f32
    %197 = vector.broadcast %cst_91 : f32 to vector<1x1x1xf32>
    %198 = arith.subf %197, %196 : vector<1x1x1xf32>
    %199 = vector.broadcast %198 : vector<1x1x1xf32> to vector<1x1x128xf32>
    %200 = arith.mulf %194, %199 : vector<1x1x128xf32>
    %201 = arith.mulf %195, %200 : vector<1x1x128xf32>
    %202 = vector.extract_strided_slice %175 {offsets = [0, 2, 0], sizes = [1, 1, 128], strides = [1, 1, 1]} : vector<1x8x128xf32> to vector<1x1x128xf32>
    %203 = arith.addf %201, %202 : vector<1x1x128xf32>
    %204 = vector.extract_strided_slice %159 {offsets = [0, 3, 0], sizes = [1, 1, 128], strides = [1, 1, 1]} : vector<1x8x128xf32> to vector<1x1x128xf32>
    %205 = vector.extract_strided_slice %4 {offsets = [0, 3, 0], sizes = [1, 1, 1], strides = [1, 1, 1]} : vector<1x8x1xf32> to vector<1x1x1xf32>
    %cst_92 = arith.constant 1.000000e+00 : f32
    %206 = vector.broadcast %cst_92 : f32 to vector<1x1x1xf32>
    %207 = arith.subf %206, %205 : vector<1x1x1xf32>
    %208 = vector.broadcast %207 : vector<1x1x1xf32> to vector<1x1x128xf32>
    %209 = arith.mulf %203, %208 : vector<1x1x128xf32>
    %210 = arith.mulf %204, %209 : vector<1x1x128xf32>
    %211 = vector.extract_strided_slice %175 {offsets = [0, 3, 0], sizes = [1, 1, 128], strides = [1, 1, 1]} : vector<1x8x128xf32> to vector<1x1x128xf32>
    %212 = arith.addf %210, %211 : vector<1x1x128xf32>
    %213 = vector.extract_strided_slice %159 {offsets = [0, 4, 0], sizes = [1, 1, 128], strides = [1, 1, 1]} : vector<1x8x128xf32> to vector<1x1x128xf32>
    %214 = vector.extract_strided_slice %4 {offsets = [0, 4, 0], sizes = [1, 1, 1], strides = [1, 1, 1]} : vector<1x8x1xf32> to vector<1x1x1xf32>
    %cst_93 = arith.constant 1.000000e+00 : f32
    %215 = vector.broadcast %cst_93 : f32 to vector<1x1x1xf32>
    %216 = arith.subf %215, %214 : vector<1x1x1xf32>
    %217 = vector.broadcast %216 : vector<1x1x1xf32> to vector<1x1x128xf32>
    %218 = arith.mulf %212, %217 : vector<1x1x128xf32>
    %219 = arith.mulf %213, %218 : vector<1x1x128xf32>
    %220 = vector.extract_strided_slice %175 {offsets = [0, 4, 0], sizes = [1, 1, 128], strides = [1, 1, 1]} : vector<1x8x128xf32> to vector<1x1x128xf32>
    %221 = arith.addf %219, %220 : vector<1x1x128xf32>
    %222 = vector.extract_strided_slice %159 {offsets = [0, 5, 0], sizes = [1, 1, 128], strides = [1, 1, 1]} : vector<1x8x128xf32> to vector<1x1x128xf32>
    %223 = vector.extract_strided_slice %4 {offsets = [0, 5, 0], sizes = [1, 1, 1], strides = [1, 1, 1]} : vector<1x8x1xf32> to vector<1x1x1xf32>
    %cst_94 = arith.constant 1.000000e+00 : f32
    %224 = vector.broadcast %cst_94 : f32 to vector<1x1x1xf32>
    %225 = arith.subf %224, %223 : vector<1x1x1xf32>
    %226 = vector.broadcast %225 : vector<1x1x1xf32> to vector<1x1x128xf32>
    %227 = arith.mulf %221, %226 : vector<1x1x128xf32>
    %228 = arith.mulf %222, %227 : vector<1x1x128xf32>
    %229 = vector.extract_strided_slice %175 {offsets = [0, 5, 0], sizes = [1, 1, 128], strides = [1, 1, 1]} : vector<1x8x128xf32> to vector<1x1x128xf32>
    %230 = arith.addf %228, %229 : vector<1x1x128xf32>
    %231 = vector.extract_strided_slice %159 {offsets = [0, 6, 0], sizes = [1, 1, 128], strides = [1, 1, 1]} : vector<1x8x128xf32> to vector<1x1x128xf32>
    %232 = vector.extract_strided_slice %4 {offsets = [0, 6, 0], sizes = [1, 1, 1], strides = [1, 1, 1]} : vector<1x8x1xf32> to vector<1x1x1xf32>
    %cst_95 = arith.constant 1.000000e+00 : f32
    %233 = vector.broadcast %cst_95 : f32 to vector<1x1x1xf32>
    %234 = arith.subf %233, %232 : vector<1x1x1xf32>
    %235 = vector.broadcast %234 : vector<1x1x1xf32> to vector<1x1x128xf32>
    %236 = arith.mulf %230, %235 : vector<1x1x128xf32>
    %237 = arith.mulf %231, %236 : vector<1x1x128xf32>
    %238 = vector.extract_strided_slice %175 {offsets = [0, 6, 0], sizes = [1, 1, 128], strides = [1, 1, 1]} : vector<1x8x128xf32> to vector<1x1x128xf32>
    %239 = arith.addf %237, %238 : vector<1x1x128xf32>
    %240 = vector.extract_strided_slice %159 {offsets = [0, 7, 0], sizes = [1, 1, 128], strides = [1, 1, 1]} : vector<1x8x128xf32> to vector<1x1x128xf32>
    %241 = vector.extract_strided_slice %4 {offsets = [0, 7, 0], sizes = [1, 1, 1], strides = [1, 1, 1]} : vector<1x8x1xf32> to vector<1x1x1xf32>
    %cst_96 = arith.constant 1.000000e+00 : f32
    %242 = vector.broadcast %cst_96 : f32 to vector<1x1x1xf32>
    %243 = arith.subf %242, %241 : vector<1x1x1xf32>
    %244 = vector.broadcast %243 : vector<1x1x1xf32> to vector<1x1x128xf32>
    %245 = arith.mulf %239, %244 : vector<1x1x128xf32>
    %246 = arith.mulf %240, %245 : vector<1x1x128xf32>
    %247 = vector.extract_strided_slice %175 {offsets = [0, 7, 0], sizes = [1, 1, 128], strides = [1, 1, 1]} : vector<1x8x128xf32> to vector<1x1x128xf32>
    %248 = arith.addf %246, %247 : vector<1x1x128xf32>
    %249 = tpu.concatenate %185, %194, %203, %212, %221, %230, %239, %248 in 1 : vector<1x1x128xf32>, vector<1x1x128xf32>, vector<1x1x128xf32>, vector<1x1x128xf32>, vector<1x1x128xf32>, vector<1x1x128xf32>, vector<1x1x128xf32>, vector<1x1x128xf32> -> vector<1x8x128xf32>
    %c0_97 = arith.constant 0 : index
    %c0_98 = arith.constant 0 : index
    %c0_99 = arith.constant 0 : index
    %250 = vector.load %arg29[%c0_97, %c0_98, %c0_99] : memref<1x1x128xf32, #tpu.memory_space<vmem>>, vector<1x1x128xf32>
    tpu.vector_store %arg29[%c0_97, %c0_98, %c0_99], %248 {strides = array<i32>} : memref<1x1x128xf32, #tpu.memory_space<vmem>>, vector<1x1x128xf32>,
    %c0_100 = arith.constant 0 : index
    %c0_101 = arith.constant 0 : index
    %c0_102 = arith.constant 0 : index
    %251 = vector.load %arg27[%c0_100, %c0_101, %c0_102] : memref<1x1x128xf32, #tpu.memory_space<vmem>>, vector<1x1x128xf32>
    tpu.vector_store %arg27[%c0_100, %c0_101, %c0_102], %248 {strides = array<i32>} : memref<1x1x128xf32, #tpu.memory_space<vmem>>, vector<1x1x128xf32>,
    %252 = arith.mulf %249, %41 : vector<1x8x128xf32>
    %c0_103 = arith.constant 0 : index
    %c0_104 = arith.constant 0 : index
    %253 = vector.load %arg16[%c0_103, %c0_104] : memref<128x128xf32, #tpu.memory_space<vmem>>, vector<128x128xf32>
    %254 = vector.shape_cast %252 : vector<1x8x128xf32> to vector<8x128xf32>
    %cst_105 = arith.constant dense<0.000000e+00> : vector<8x128xf32>
    %255 = tpu.matmul %254, %253, %cst_105 {dimension_numbers = #tpu.dot_dimension_numbers<[1], [0], [0], [1], [0, 0, 1, 1], [], []>} : vector<8x128xf32>, vector<128x128xf32>, vector<8x128xf32> -> vector<8x128xf32>
    %256 = vector.shape_cast %255 : vector<8x128xf32> to vector<1x8x128xf32>
    %c0_106 = arith.constant 0 : index
    %c0_107 = arith.constant 0 : index
    %257 = vector.load %arg17[%c0_106, %c0_107] : memref<1x128xf32, #tpu.memory_space<vmem>>, vector<1x128xf32>
    %258 = vector.shape_cast %257 : vector<1x128xf32> to vector<1x1x128xf32>
    %259 = vector.broadcast %258 : vector<1x1x128xf32> to vector<1x8x128xf32>
    %260 = arith.addf %256, %259 : vector<1x8x128xf32>
    %261 = arith.addf %260, %0 : vector<1x8x128xf32>
    %262 = arith.mulf %261, %261 : vector<1x8x128xf32>
    %cst_108 = arith.constant dense<0.000000e+00> : vector<1x8xf32>
    %263 = vector.multi_reduction <add>, %262, %cst_108 [2] : vector<1x8x128xf32> to vector<1x8xf32>
    %264 = vector.shape_cast %263 : vector<1x8xf32> to vector<1x8x1xf32>
    %cst_109 = arith.constant 1.280000e+02 : f32
    %265 = vector.broadcast %cst_109 : f32 to vector<1x8x1xf32>
    %266 = arith.divf %264, %265 : vector<1x8x1xf32>
    %cst_110 = arith.constant 9.99999997E-7 : f32
    %267 = vector.broadcast %cst_110 : f32 to vector<1x8x1xf32>
    %268 = arith.addf %266, %267 : vector<1x8x1xf32>
    %269 = math.rsqrt %268 : vector<1x8x1xf32>
    %270 = vector.broadcast %269 : vector<1x8x1xf32> to vector<1x8x128xf32>
    %271 = arith.mulf %261, %270 : vector<1x8x128xf32>
    %c0_111 = arith.constant 0 : index
    %c0_112 = arith.constant 0 : index
    %272 = vector.load %arg18[%c0_111, %c0_112] : memref<1x128xf32, #tpu.memory_space<vmem>>, vector<1x128xf32>
    %cst_113 = arith.constant 1.000000e+00 : f32
    %273 = vector.broadcast %cst_113 : f32 to vector<1x128xf32>
    %274 = arith.addf %273, %272 : vector<1x128xf32>
    %275 = vector.shape_cast %274 : vector<1x128xf32> to vector<1x1x128xf32>
    %276 = vector.broadcast %275 : vector<1x1x128xf32> to vector<1x8x128xf32>
    %277 = arith.mulf %271, %276 : vector<1x8x128xf32>
    %c0_114 = arith.constant 0 : index
    %c0_115 = arith.constant 0 : index
    %278 = vector.load %arg19[%c0_114, %c0_115] : memref<128x256xf32, #tpu.memory_space<vmem>>, vector<128x256xf32>
    %279 = vector.shape_cast %277 : vector<1x8x128xf32> to vector<8x128xf32>
    %cst_116 = arith.constant dense<0.000000e+00> : vector<8x256xf32>
    %280 = tpu.matmul %279, %278, %cst_116 {dimension_numbers = #tpu.dot_dimension_numbers<[1], [0], [0], [1], [0, 0, 1, 1], [], []>} : vector<8x128xf32>, vector<128x256xf32>, vector<8x256xf32> -> vector<8x256xf32>
    %281 = vector.shape_cast %280 : vector<8x256xf32> to vector<1x8x256xf32>
    %c0_117 = arith.constant 0 : index
    %c0_118 = arith.constant 0 : index
    %282 = vector.load %arg20[%c0_117, %c0_118] : memref<1x256xf32, #tpu.memory_space<vmem>>, vector<1x256xf32>
    %283 = vector.shape_cast %282 : vector<1x256xf32> to vector<1x1x256xf32>
    %284 = vector.broadcast %283 : vector<1x1x256xf32> to vector<1x8x256xf32>
    %285 = arith.addf %281, %284 : vector<1x8x256xf32>
    %cst_119 = arith.constant 5.000000e-01 : f32
    %286 = vector.broadcast %cst_119 : f32 to vector<1x8x256xf32>
    %287 = arith.mulf %286, %285 : vector<1x8x256xf32>
    %cst_120 = arith.constant 4.471500e-02 : f32
    %288 = vector.broadcast %cst_120 : f32 to vector<1x8x256xf32>
    %289 = arith.mulf %288, %285 : vector<1x8x256xf32>
    %290 = arith.mulf %289, %285 : vector<1x8x256xf32>
    %291 = arith.mulf %290, %285 : vector<1x8x256xf32>
    %292 = arith.addf %285, %291 : vector<1x8x256xf32>
    %cst_121 = arith.constant 0.797884583 : f32
    %293 = vector.broadcast %cst_121 : f32 to vector<1x8x256xf32>
    %294 = arith.mulf %293, %292 : vector<1x8x256xf32>
    %295 = math.tanh %294 : vector<1x8x256xf32>
    %cst_122 = arith.constant 1.000000e+00 : f32
    %296 = vector.broadcast %cst_122 : f32 to vector<1x8x256xf32>
    %297 = arith.addf %296, %295 : vector<1x8x256xf32>
    %298 = arith.mulf %287, %297 : vector<1x8x256xf32>
    %c0_123 = arith.constant 0 : index
    %c0_124 = arith.constant 0 : index
    %299 = vector.load %arg21[%c0_123, %c0_124] : memref<128x256xf32, #tpu.memory_space<vmem>>, vector<128x256xf32>
    %300 = vector.shape_cast %277 : vector<1x8x128xf32> to vector<8x128xf32>
    %cst_125 = arith.constant dense<0.000000e+00> : vector<8x256xf32>
    %301 = tpu.matmul %300, %299, %cst_125 {dimension_numbers = #tpu.dot_dimension_numbers<[1], [0], [0], [1], [0, 0, 1, 1], [], []>} : vector<8x128xf32>, vector<128x256xf32>, vector<8x256xf32> -> vector<8x256xf32>
    %302 = vector.shape_cast %301 : vector<8x256xf32> to vector<1x8x256xf32>
    %c0_126 = arith.constant 0 : index
    %c0_127 = arith.constant 0 : index
    %303 = vector.load %arg22[%c0_126, %c0_127] : memref<1x256xf32, #tpu.memory_space<vmem>>, vector<1x256xf32>
    %304 = vector.shape_cast %303 : vector<1x256xf32> to vector<1x1x256xf32>
    %305 = vector.broadcast %304 : vector<1x1x256xf32> to vector<1x8x256xf32>
    %306 = arith.addf %302, %305 : vector<1x8x256xf32>
    %307 = arith.mulf %298, %306 : vector<1x8x256xf32>
    %c0_128 = arith.constant 0 : index
    %c0_129 = arith.constant 0 : index
    %308 = vector.load %arg23[%c0_128, %c0_129] : memref<256x128xf32, #tpu.memory_space<vmem>>, vector<256x128xf32>
    %309 = vector.shape_cast %307 : vector<1x8x256xf32> to vector<8x256xf32>
    %cst_130 = arith.constant dense<0.000000e+00> : vector<8x128xf32>
    %310 = tpu.matmul %309, %308, %cst_130 {dimension_numbers = #tpu.dot_dimension_numbers<[1], [0], [0], [1], [0, 0, 1, 1], [], []>} : vector<8x256xf32>, vector<256x128xf32>, vector<8x128xf32> -> vector<8x128xf32>
    %311 = vector.shape_cast %310 : vector<8x128xf32> to vector<1x8x128xf32>
    %c0_131 = arith.constant 0 : index
    %c0_132 = arith.constant 0 : index
    %312 = vector.load %arg24[%c0_131, %c0_132] : memref<1x128xf32, #tpu.memory_space<vmem>>, vector<1x128xf32>
    %313 = vector.shape_cast %312 : vector<1x128xf32> to vector<1x1x128xf32>
    %314 = vector.broadcast %313 : vector<1x1x128xf32> to vector<1x8x128xf32>
    %315 = arith.addf %311, %314 : vector<1x8x128xf32>
    %316 = arith.addf %315, %261 : vector<1x8x128xf32>
    %c0_133 = arith.constant 0 : index
    %c0_134 = arith.constant 0 : index
    %c0_135 = arith.constant 0 : index
    %317 = vector.load %arg25[%c0_133, %c0_134, %c0_135] : memref<1x8x128xf32, #tpu.memory_space<vmem>>, vector<1x8x128xf32>
    tpu.vector_store %arg25[%c0_133, %c0_134, %c0_135], %316 {strides = array<i32>} : memref<1x8x128xf32, #tpu.memory_space<vmem>>, vector<1x8x128xf32>,
    return
  }
  func.func @transform_0(%arg0: i32, %arg1: i32) -> (i32, i32, i32) {
    %c0_i32 = arith.constant 0 : i32
    %c0_i32_0 = arith.constant 0 : i32
    return %arg0, %arg1, %c0_i32 : i32, i32, i32
  }
  func.func @transform_1(%arg0: i32, %arg1: i32) -> (i32, i32, i32) {
    %c0_i32 = arith.constant 0 : i32
    %c0_i32_0 = arith.constant 0 : i32
    return %arg0, %arg1, %c0_i32 : i32, i32, i32
  }
  func.func @transform_2(%arg0: i32, %arg1: i32) -> (i32, i32) {
    %c0_i32 = arith.constant 0 : i32
    %c0_i32_0 = arith.constant 0 : i32
    %c0_i32_1 = arith.constant 0 : i32
    return %c0_i32, %c0_i32_0 : i32, i32
  }
  func.func @transform_3(%arg0: i32, %arg1: i32) -> (i32, i32) {
    %c0_i32 = arith.constant 0 : i32
    %c0_i32_0 = arith.constant 0 : i32
    %c0_i32_1 = arith.constant 0 : i32
    return %c0_i32, %c0_i32_0 : i32, i32
  }
  func.func @transform_4(%arg0: i32, %arg1: i32) -> (i32, i32) {
    %c0_i32 = arith.constant 0 : i32
    %c0_i32_0 = arith.constant 0 : i32
    %c0_i32_1 = arith.constant 0 : i32
    return %c0_i32, %c0_i32_0 : i32, i32
  }
  func.func @transform_5(%arg0: i32, %arg1: i32) -> (i32, i32) {
    %c0_i32 = arith.constant 0 : i32
    %c0_i32_0 = arith.constant 0 : i32
    %c0_i32_1 = arith.constant 0 : i32
    return %c0_i32, %c0_i32_0 : i32, i32
  }
  func.func @transform_6(%arg0: i32, %arg1: i32) -> (i32, i32) {
    %c0_i32 = arith.constant 0 : i32
    %c0_i32_0 = arith.constant 0 : i32
    %c0_i32_1 = arith.constant 0 : i32
    return %c0_i32, %c0_i32_0 : i32, i32
  }
  func.func @transform_7(%arg0: i32, %arg1: i32) -> (i32, i32) {
    %c0_i32 = arith.constant 0 : i32
    %c0_i32_0 = arith.constant 0 : i32
    %c0_i32_1 = arith.constant 0 : i32
    return %c0_i32, %c0_i32_0 : i32, i32
  }
  func.func @transform_8(%arg0: i32, %arg1: i32) -> (i32, i32) {
    %c0_i32 = arith.constant 0 : i32
    %c0_i32_0 = arith.constant 0 : i32
    %c0_i32_1 = arith.constant 0 : i32
    return %c0_i32, %c0_i32_0 : i32, i32
  }
  func.func @transform_9(%arg0: i32, %arg1: i32) -> (i32, i32) {
    %c0_i32 = arith.constant 0 : i32
    %c0_i32_0 = arith.constant 0 : i32
    %c0_i32_1 = arith.constant 0 : i32
    return %c0_i32, %c0_i32_0 : i32, i32
  }
  func.func @transform_10(%arg0: i32, %arg1: i32) -> (i32, i32, i32) {
    %c0_i32 = arith.constant 0 : i32
    %c0_i32_0 = arith.constant 0 : i32
    %c0_i32_1 = arith.constant 0 : i32
    %c0_i32_2 = arith.constant 0 : i32
    return %c0_i32, %c0_i32_0, %c0_i32_1 : i32, i32, i32
  }
  func.func @transform_11(%arg0: i32, %arg1: i32) -> (i32, i32) {
    %c0_i32 = arith.constant 0 : i32
    %c0_i32_0 = arith.constant 0 : i32
    %c0_i32_1 = arith.constant 0 : i32
    return %c0_i32, %c0_i32_0 : i32, i32
  }
  func.func @transform_12(%arg0: i32, %arg1: i32) -> (i32, i32, i32) {
    %c0_i32 = arith.constant 0 : i32
    %c0_i32_0 = arith.constant 0 : i32
    %c0_i32_1 = arith.constant 0 : i32
    %c0_i32_2 = arith.constant 0 : i32
    return %c0_i32, %c0_i32_0, %c0_i32_1 : i32, i32, i32
  }
  func.func @transform_13(%arg0: i32, %arg1: i32) -> (i32, i32) {
    %c0_i32 = arith.constant 0 : i32
    %c0_i32_0 = arith.constant 0 : i32
    %c0_i32_1 = arith.constant 0 : i32
    return %c0_i32, %c0_i32_0 : i32, i32
  }
  func.func @transform_14(%arg0: i32, %arg1: i32) -> (i32, i32) {
    %c0_i32 = arith.constant 0 : i32
    %c0_i32_0 = arith.constant 0 : i32
    %c0_i32_1 = arith.constant 0 : i32
    return %c0_i32, %c0_i32_0 : i32, i32
  }
  func.func @transform_15(%arg0: i32, %arg1: i32) -> (i32, i32) {
    %c0_i32 = arith.constant 0 : i32
    %c0_i32_0 = arith.constant 0 : i32
    %c0_i32_1 = arith.constant 0 : i32
    return %c0_i32, %c0_i32_0 : i32, i32
  }
  func.func @transform_16(%arg0: i32, %arg1: i32) -> (i32, i32) {
    %c0_i32 = arith.constant 0 : i32
    %c0_i32_0 = arith.constant 0 : i32
    %c0_i32_1 = arith.constant 0 : i32
    return %c0_i32, %c0_i32_0 : i32, i32
  }
  func.func @transform_17(%arg0: i32, %arg1: i32) -> (i32, i32) {
    %c0_i32 = arith.constant 0 : i32
    %c0_i32_0 = arith.constant 0 : i32
    %c0_i32_1 = arith.constant 0 : i32
    return %c0_i32, %c0_i32_0 : i32, i32
  }
  func.func @transform_18(%arg0: i32, %arg1: i32) -> (i32, i32) {
    %c0_i32 = arith.constant 0 : i32
    %c0_i32_0 = arith.constant 0 : i32
    %c0_i32_1 = arith.constant 0 : i32
    return %c0_i32, %c0_i32_0 : i32, i32
  }
  func.func @transform_19(%arg0: i32, %arg1: i32) -> (i32, i32) {
    %c0_i32 = arith.constant 0 : i32
    %c0_i32_0 = arith.constant 0 : i32
    %c0_i32_1 = arith.constant 0 : i32
    return %c0_i32, %c0_i32_0 : i32, i32
  }
  func.func @transform_20(%arg0: i32, %arg1: i32) -> (i32, i32) {
    %c0_i32 = arith.constant 0 : i32
    %c0_i32_0 = arith.constant 0 : i32
    %c0_i32_1 = arith.constant 0 : i32
    return %c0_i32, %c0_i32_0 : i32, i32
  }
  func.func @transform_21(%arg0: i32, %arg1: i32) -> (i32, i32) {
    %c0_i32 = arith.constant 0 : i32
    %c0_i32_0 = arith.constant 0 : i32
    %c0_i32_1 = arith.constant 0 : i32
    return %c0_i32, %c0_i32_0 : i32, i32
  }
  func.func @transform_22(%arg0: i32, %arg1: i32) -> (i32, i32) {
    %c0_i32 = arith.constant 0 : i32
    %c0_i32_0 = arith.constant 0 : i32
    %c0_i32_1 = arith.constant 0 : i32
    return %c0_i32, %c0_i32_0 : i32, i32
  }
  func.func @transform_23(%arg0: i32, %arg1: i32) -> (i32, i32, i32) {
    %c0_i32 = arith.constant 0 : i32
    %c0_i32_0 = arith.constant 0 : i32
    return %arg0, %arg1, %c0_i32 : i32, i32, i32
  }
  func.func @transform_24(%arg0: i32, %arg1: i32) -> (i32, i32, i32) {
    %c0_i32 = arith.constant 0 : i32
    %c0_i32_0 = arith.constant 0 : i32
    %c0_i32_1 = arith.constant 0 : i32
    return %arg0, %c0_i32, %c0_i32_0 : i32, i32, i32
  }
  func.func @transform_25(%arg0: i32, %arg1: i32) -> (i32, i32, i32) {
    %c0_i32 = arith.constant 0 : i32
    %c0_i32_0 = arith.constant 0 : i32
    %c0_i32_1 = arith.constant 0 : i32
    return %arg0, %c0_i32, %c0_i32_0 : i32, i32, i32
  }
}

</mosaic_0001>

<bundles_post_ra>
// kernel: tpu_custom_call.1
= control target key start
LH: loop header
LB: loop body
LE: loop exit
PB: predicated region body
PF: predicated region fallthrough
CT: control target
= control target key end

     0   :  { %s4543_s0 = inlined_call_operand.vmem [shape: f32[2,16,128], index: 0, kind: input, shape index: {}]   ;;  %s4544_s1 = inlined_call_operand.vmem [shape: f32[2,16,1], index: 1, kind: input, shape index: {}]   ;;  %s4545_s2 = inlined_call_operand.vmem [shape: f32[1,128], index: 2, kind: input, shape index: {}]   ;;  %s4546_s3 = inlined_call_operand.hbm [shape: f32[128,128], index: 3, kind: input, shape index: {}]   ;;  %s4547_s4 = inlined_call_operand.hbm [shape: f32[1,128], index: 4, kind: input, shape index: {}]   ;;  %s4548_s5 = inlined_call_operand.hbm [shape: f32[128,128], index: 5, kind: input, shape index: {}]   ;;  %s4549_s6 = inlined_call_operand.vmem [shape: f32[1,128], index: 6, kind: input, shape index: {}]   ;;  %s4550_s7 = inlined_call_operand.vmem [shape: f32[4,128], index: 7, kind: input, shape index: {}]   ;;  %s4551_s8 = inlined_call_operand.vmem [shape: f32[1,128], index: 8, kind: input, shape index: {}]   ;;  %s4552_s9 = inlined_call_operand.vmem [shape: f32[1,128], index: 9, kind: input, shape index: {}]   ;;  %s4553_s10 = inlined_call_operand.hbm [shape: f32[4,32,32], index: 10, kind: input, shape index: {}]   ;;  %s4554_s11 = inlined_call_operand.vmem [shape: f32[1,128], index: 11, kind: input, shape index: {}]   ;;  %s4555_s12 = inlined_call_operand.hbm [shape: f32[4,32,32], index: 12, kind: input, shape index: {}]   ;;  %s4556_s13 = inlined_call_operand.vmem [shape: f32[1,128], index: 13, kind: input, shape index: {}]   ;;  %s4557_s14 = inlined_call_operand.hbm [shape: f32[128,128], index: 14, kind: input, shape index: {}]   ;;  %s4558_s15 = inlined_call_operand.vmem [shape: f32[1,128], index: 15, kind: input, shape index: {}]   ;;  %s4559_s16 = inlined_call_operand.vmem [shape: f32[1,128], index: 16, kind: input, shape index: {}]   ;;  %s4560_s17 = inlined_call_operand.hbm [shape: f32[128,256], index: 17, kind: input, shape index: {}]   ;;  %s4561_s18 = inlined_call_operand.vmem [shape: f32[1,256], index: 18, kind: input, shape index: {}]   ;;  %s4562_s19 = inlined_call_operand.hbm [shape: f32[128,256], index: 19, kind: input, shape index: {}]   ;;  %s4563_s20 = inlined_call_operand.vmem [shape: f32[1,256], index: 20, kind: input, shape index: {}]   ;;  %s4564_s21 = inlined_call_operand.hbm [shape: f32[256,128], index: 21, kind: input, shape index: {}]   ;;  %s4565_s22 = inlined_call_operand.vmem [shape: f32[1,128], index: 22, kind: input, shape index: {}]   ;;  %s4566_s23 = inlined_call_operand.hbm [shape: f32[2,16,128], index: 23, kind: output, shape index: {0}]   ;;  %s4567_s24 = inlined_call_operand.vmem [shape: f32[2,3,128], index: 24, kind: output, shape index: {1}]   ;;  %s4568_s25 = inlined_call_operand.hbm [shape: f32[2,1,128], index: 25, kind: output, shape index: {2}]  }
   0x1   :  { %4588 = sst [smem:[#allocation39_spill]] %s4543_s0 }
   0x2   :  { %4589 = sst [smem:[#allocation40_spill]] %s4544_s1 }
   0x3   :  { %4590 = sst [smem:[#allocation41_spill]] %s4545_s2 }
   0x4   :  { %4591 = sst [smem:[#allocation42_spill]] %s4546_s3 }
   0x5   :  { %4592 = sst [smem:[#allocation43_spill]] %s4547_s4 }
   0x6   :  { %4593 = sst [smem:[#allocation44_spill]] %s4548_s5 }
   0x7   :  { %4594 = sst [smem:[#allocation45_spill]] %s4549_s6 }
   0x8   :  { %4595 = sst [smem:[#allocation46_spill]] %s4550_s7 }
   0x9   :  { %4596 = sst [smem:[#allocation47_spill]] %s4551_s8 }
   0xa   :  { %4597 = sst [smem:[#allocation48_spill]] %s4552_s9 }
   0xb   :  { %4598 = sst [smem:[#allocation49_spill]] %s4553_s10 }
   0xc   :  { %4599 = sst [smem:[#allocation50_spill]] %s4555_s12 }
   0xd   :  { %4600 = sst [smem:[#allocation51_spill]] %s4557_s14 }
   0xe   :  { %4601 = sst [smem:[#allocation52_spill]] %s4558_s15 }
   0xf   :  { %4602 = sst [smem:[#allocation53_spill]] %s4559_s16 }
  0x10   :  { %4603 = sst [smem:[#allocation54_spill]] %s4560_s17 }
  0x11   :  { %4604 = sst [smem:[#allocation55_spill]] %s4561_s18 }
  0x12   :  { %4605 = sst [smem:[#allocation56_spill]] %s4562_s19 }
  0x13   :  { %4606 = sst [smem:[#allocation57_spill]] %s4563_s20 }
  0x14   :  { %4607 = sst [smem:[#allocation58_spill]] %s4564_s21 }
  0x15   :  { %4608 = sst [smem:[#allocation59_spill]] %s4565_s22 }
  0x16   :  { %4609 = sst [smem:[#allocation60_spill]] %s4566_s23 }
  0x17   :  { %4610 = sst [smem:[#allocation61_spill]] %s4568_s25 }
  0x18   :  { %31 = vsyncpa [#allocation5], 0 }
  0x19   :  { %32 = vsyncpa [#allocation8], 0 }
  0x1a   :  { %33 = vsyncpa [#allocation11], 0 }
  0x1b   :  { %34 = vsyncpa [#allocation14], 0 }
  0x1c   :  { %35 = vsyncpa [#allocation17], 0 }
  0x1d   :  { %36 = vsyncpa [#allocation6], 0 }
  0x1e   :  { %38 = vsyncpa [#allocation6 + $0x1], 0 }
  0x1f   :  { %39 = vsyncpa [#allocation21], 0 }
  0x20   :  { %41 = vsyncpa [#allocation21 + $0x1], 0  ;;  %s3937_s29 = smov 0   ;;  %s3939_s2 = smov 0  }
  0x21   :  { %s3941_s6 = smov 0   ;;  %s3943_s30 = smov 0  }
  0x22   :  { %s3945_s7 = smov 0   ;;  %s3947_s3 = smov 0  }
  0x23   :  { %s3949_s26 = smov 0   ;;  %s3951_s1 = smov 0  }
  0x24   :  { %s3953_s8 = smov 0   ;;  %s3955_s27 = smov 0  }
  0x25   :  { %s3957_s4 = smov 0  }
  0x26 LB: > { %4611 = sst [smem:[#allocation29_spill]] %s3751_s6  ;;  %s4571_s28 = sadd.s32 4294967295, %s3783_s4   ;;  %s3783_s4 = sphi %s3957_s4, %s47_s4   ;;  %s3779_s27 = sphi %s3955_s27, %s4674_s27   ;;  %s3775_s8 = sphi %s3953_s8, %s4673_s8   ;;  %s3771_s1 = sphi %s3951_s1, %s4672_s1   ;;  %s3767_s26 = sphi %s3949_s26, %s4671_s26   ;;  %s3763_s3 = sphi %s3947_s3, %s4670_s3   ;;  %s3759_s7 = sphi %s3945_s7, %s4678_s7   ;;  %s3755_s30 = sphi %s3943_s30, %s4677_s30   ;;  %s3751_s6 = sphi %s3941_s6, %s4668_s6   ;;  %s3747_s2 = sphi %s3939_s2, %s4676_s2   ;;  %s3743_s29 = sphi %s3937_s29, %s4675_s29  }
  0x27   : > { %4612 = sst [smem:[#allocation30_spill]] %s3755_s30  ;;  %s2786_s9 = sadd.s32 4294967294, %s3783_s4  }
  0x28   : > { %4613 = sst [smem:[#allocation31_spill]] %s3763_s3  ;;  %s56_s5 = sadd.s32 1, %s3775_s8 }
  0x29   : > { %4614 = sst [smem:[#allocation32_spill]] %s3775_s8  ;;  %s59_s0 = sadd.s32 1, %s3779_s27 }
  0x2a   : > { %4615 = sst [smem:[#allocation33_spill]] %s3779_s27  ;;  %p57_p0 = scmp.ge.s32.totalorder %s56_s5, 2 }
  0x2b   : > { %s565_s23 = sadd.s32 1, %s3763_s3  ;;  %p575_p1 = scmp.ne.s32.totalorder %s3763_s3, %s3759_s7 }
  0x2c   : > { %p4001_p2 = scmp.eq.s32.totalorder %s4571_s28, 3  ;;  %s4680_s5 = smov (%p57_p0, %s56_s5), 0 }
  0x2d   : > { %4617 = sst [smem:[#allocation34_spill]] %s4680_s5  ;;  %s4682_s0 = smov (!%p57_p0, %s59_s0), %s3779_s27 }
  0x2e   : > { %s561_s25 = ssub.s32 %s3775_s8, %s4680_s5  ;;  %p4012_p3 = por %p4001_p2, %p575_p1 }
  0x2f   : > { %p61_p4 = scmp.ge.s32.totalorder %s4682_s0, 2  ;;  %p581_p5 = scmp.ne.s32.totalorder %s3759_s7, %s3755_s30 }
  0x30   : > { %s4618_s20 = scalar_select %p4012_p3, 1, 0 }
  0x31   : > { %p4018_p6 = scmp.eq.s32.totalorder %s2786_s9, 3  ;;  %s617_s18 = sadd.s32 1, %s3751_s6 }
  0x32   : > { %4619 = sst [smem:[#allocation35_spill]] %s4618_s20  ;;  %s4684_s0 = smov (%p61_p4, %s4682_s0), 0 }
  0x33   : > { %4621 = sst [smem:[#allocation36_spill]] %s4684_s0  ;;  %p4027_p7 = por %p4018_p6, %p581_p5 }
  0x34   : > { %p627_p8 = scmp.ne.s32.totalorder %s3751_s6, %s3747_s2  ;;  %s560_s8 = ssub.s32 %s3779_s27, %s4684_s0 }
  0x35   : > { %s4622_s5 = scalar_select %p4027_p7, 1, 0 }
  0x36   : > { %p633_p9 = scmp.ne.s32.totalorder %s3747_s2, %s3743_s29  ;;  %s562_s30 = sor.u32 %s561_s25, %s560_s8 }
  0x37   : > { %p615_p10 = scmp.eq.s32.totalorder %s560_s8, 0  ;;  %p563_p11 = scmp.eq.s32.totalorder %s562_s30, 0 }
  0x38   : > { %p4039_p12 = por %p627_p8, %p4001_p2  ;;  %p4051_p13 = por %p633_p9, %p4018_p6 }
  0x39   : > { %s4044_s20 = scalar_select %p615_p10, %s3751_s6, %s617_s18  }
  0x3a   : > { %s4047_s16 = scalar_select %p563_p11, %s3763_s3, %s565_s23  }
  0x3b   : > { %4624 = sst [smem:[#allocation37_spill]] %s4044_s20  ;;  %p2787_p0 = scmp.ge.s32.totalorder %s3783_s4, 1 }
  0x3c   : > { %4625 = sst [smem:[#allocation38_spill]] %s4047_s16  ;;  %p641_p1 = scmp.lt.s32.totalorder %s3783_s4, 5 }
  0x3d   : > { %s4626_s15 = scalar_select %p4051_p13, 1, 0 }
  0x3e   : > { %s4627_s0 = sadd.s32 4294967295, %s3783_s4   ;;  %p4063_p2 = pnand %p2787_p0, %p641_p1 }
  0x3f   : > { %p4059_p4 = scmp.eq.s32.totalorder %s4627_s0, 0  ;;  %s3785_s18 = smov [#allocation7]  }
  0x40   : > { %s670_s23 = sshll.u32 %s3785_s18, 4  ;;  %p3195_p5 = pneg %p4063_p2  ;;  %s671_s23 = int_to_ptr.vmem [resolvable:$true] %s670_s23 }
  0x41   : > { %s3786_s8 = smov [#allocation10]   ;;  %s3787_s0 = smov [#allocation13]  }
  0x42   : > { %p4071_p6 = pnand %p4059_p4, %p3195_p5  ;;  %s705_s28 = sshll.u32 %s3786_s8, 4  ;;  %s4075_s28 = int_to_ptr.vmem [resolvable:$true] %s705_s28 }
  0x43   : > { %s737_s27 = sshll.u32 %s3787_s0, 4  ;;  %s3394_s16 = scalar_lea.vmem %s671_s23, 16  ;;  %s4077_s27 = int_to_ptr.vmem [resolvable:$true] %s737_s27 }
  0x44   : > { %p4081_p8 = pneg %p4071_p6  ;;  %p3395_p9 = scmp.ne.s32.totalorder %s671_s23, %s3394_s16 }
  0x45   : > { %s3401_s3 = scalar_lea.vmem %s671_s23, 32  ;;  %p3402_p0 = scmp.lt.s32.totalorder %s671_s23, %s671_s23 }
  0x46   : > { %p3397_p10 = pnand %p3395_p9, %p4081_p8  ;;  %p3403_p1 = scmp.lt.s32.totalorder %s3401_s3, %s3394_s16 }
  0x48   : > { %p3398_p11 = pneg %p3397_p10  ;;  %p3404_p5 = por %p3403_p1, %p3402_p0 }
  0x4a   : > { %p3405_p13 = pnand %p3404_p5, %p3398_p11 }
  0x4c   : > { %3408 = shalt.err (!%p3405_p13)
}
  0x4d   : > { %s4632_s20 = sld [smem:[#allocation43_spill]]  ;;  %s3420_s6 = scalar_lea.vmem %s4075_s28, 2048 }
  0x4e   : > { %p3421_p7 = scmp.ne.s32.totalorder %s4075_s28, %s3420_s6  ;;  %p3428_p3 = scmp.lt.s32.totalorder %s4075_s28, %s4075_s28 }
  0x4f   : > { %p3429_p0 = scmp.lt.s32.totalorder %s3420_s6, %s3420_s6 }
  0x50   : > { %p3423_p9 = pnand %p3421_p7, %p4081_p8 }
  0x51   : > { %p3430_p11 = por %p3429_p0, %p3428_p3 }
  0x52   : > { %p3424_p10 = pneg %p3423_p9 }
  0x53   : > { %3201 = dma.hbm_to_vmem [thread:$0]  (!%p4071_p6), %s4632_s20, 16, %s671_s23, [#allocation8]  }
  0x54   : > { %p3431_p13 = pnand %p3430_p11, %p3424_p10 }
  0x56   : > { %3434 = shalt.err (!%p3431_p13)
}
  0x57   : > { %s4582_s16 = smov 128   ;;  %s4584_s3 = smov 8  }
  0x58   : > { %s4633_s10 = sld [smem:[#allocation49_spill]]  ;;  %s3446_s6 = scalar_lea.vmem %s4077_s27, 2048 }
  0x59   : > { %p3447_p3 = scmp.ne.s32.totalorder %s4077_s27, %s3446_s6  ;;  %p3454_p5 = scmp.lt.s32.totalorder %s4077_s27, %s4077_s27 }
  0x5a   : > { %p3455_p9 = scmp.lt.s32.totalorder %s3446_s6, %s3446_s6 }
  0x5b   : > { %p3449_p7 = pnand %p3447_p3, %p4081_p8 }
  0x5c   : > { %p3456_p10 = por %p3455_p9, %p3454_p5 }
  0x5d   : > { %p3450_p1 = pneg %p3449_p7 }
  0x5e   : > { %3207 = dma.hbm_to_vmem [thread:$0]  (!%p4071_p6), %s4633_s10, 2048, %s4075_s28, [#allocation11], %s4582_s16, %s4582_s16, %s4584_s3  }
  0x5f   : > { %p3457_p0 = pnand %p3456_p10, %p3450_p1 }
  0x61   : > { %3460 = shalt.err (!%p3457_p0)
}
  0x62   : > { %s4634_s14 = sld [smem:[#allocation51_spill]]  ;;  %s3790_s28 = smov [#allocation16]  }
  0x63   : > { %s772_s20 = sshll.u32 %s3790_s28, 4  ;;  %s773_s20 = int_to_ptr.vmem [resolvable:$true] %s772_s20 }
  0x64   : > { %s3472_s23 = scalar_lea.vmem %s773_s20, 4096  ;;  %p3480_p7 = scmp.lt.s32.totalorder %s773_s20, %s773_s20 }
  0x65   : > { %p3473_p11 = scmp.ne.s32.totalorder %s773_s20, %s3472_s23  ;;  %p3481_p1 = scmp.lt.s32.totalorder %s3472_s23, %s3472_s23 }
  0x67   : > { %p3475_p13 = pnand %p3473_p11, %p4081_p8  ;;  %p3482_p5 = por %p3481_p1, %p3480_p7 }
  0x68   : > { %3213 = dma.hbm_to_vmem [thread:$0]  (!%p4071_p6), %s4634_s14, 2048, %s4077_s27, [#allocation14], %s4582_s16, %s4582_s16, %s4584_s3  }
  0x69   : > { %p3476_p3 = pneg %p3475_p13 }
  0x6b   : > { %p3483_p9 = pnand %p3482_p5, %p3476_p3 }
  0x6d   : > { %3486 = shalt.err (!%p3483_p9)
}
  0x6e   : > { %s4586_s6 = smov 256   ;;  %s4587_s10 = smov 16  }
  0x6f   : > { %s4635_s19 = sld [smem:[#allocation56_spill]]  ;;  %s3793_s0 = smov [#allocation4]  }
  0x70   : > { %s656_s28 = sshll.u32 %s3793_s0, 4  ;;  %s3794_s16 = smov [#allocation9]   ;;  %s657_s28 = int_to_ptr.vmem [resolvable:$true] %s656_s28 }
  0x71   : > { %s680_s23 = sshll.u32 %s3794_s16, 4  ;;  %s3498_s3 = scalar_lea.vmem %s657_s28, 2048  ;;  %s681_s23 = int_to_ptr.vmem [resolvable:$true] %s680_s23 }
  0x72   : > { %p3499_p10 = scmp.ne.s32.totalorder %s657_s28, %s3498_s3  ;;  %p3506_p13 = scmp.lt.s32.totalorder %s657_s28, %s657_s28 }
  0x73   : > { %p3507_p3 = scmp.lt.s32.totalorder %s3498_s3, %s3498_s3 }
  0x74   : > { %p3501_p0 = pnand %p3499_p10, %p4081_p8 }
  0x75   : > { %3219 = dma.hbm_to_vmem [thread:$0]  (!%p4071_p6), %s4635_s19, 4096, %s773_s20, [#allocation17], %s4586_s6, %s4586_s6, %s4587_s10  }
  0x76   : > { %p3502_p11 = pneg %p3501_p0  ;;  %p3508_p7 = por %p3507_p3, %p3506_p13 }
  0x78   : > { %p3509_p1 = pnand %p3508_p7, %p3502_p11 }
  0x7a   : > { %3512 = shalt.err (!%p3509_p1)
}
  0x7b   : > { %s4636_s14 = smov 8   ;;  %s4637_s27 = smov 128  }
  0x7c   : > { %s4638_s0 = sld [smem:[#allocation42_spill]]  ;;  %s3524_s16 = scalar_lea.vmem %s681_s23, 2048 }
  0x7d   : > { %p3525_p5 = scmp.ne.s32.totalorder %s681_s23, %s3524_s16  ;;  %p3532_p0 = scmp.lt.s32.totalorder %s681_s23, %s681_s23 }
  0x7e   : > { %p3533_p13 = scmp.lt.s32.totalorder %s3524_s16, %s3524_s16 }
  0x7f   : > { %p3527_p9 = pnand %p3525_p5, %p4081_p8 }
  0x80   : > { %p3534_p11 = por %p3533_p13, %p3532_p0 }
  0x81   : > { %p3528_p10 = pneg %p3527_p9 }
  0x82   : > { %3198 = dma.hbm_to_vmem [thread:$0]  (!%p4071_p6), %s4638_s0, 2048, %s657_s28, [#allocation5], %s4637_s27, %s4637_s27, %s4636_s14  }
  0x83   : > { %p3535_p3 = pnand %p3534_p11, %p3528_p10 }
  0x85   : > { %3538 = shalt.err (!%p3535_p3)
}
  0x86   : > { %s4639_s8 = sld [smem:[#allocation44_spill]]  ;;  %s3795_s28 = smov [#allocation12]  }
  0x87   : > { %s721_s0 = sshll.u32 %s3795_s28, 4  ;;  %s3796_s6 = smov [#allocation15]   ;;  %s722_s0 = int_to_ptr.vmem [resolvable:$true] %s721_s0 }
  0x88   : > { %s756_s10 = sshll.u32 %s3796_s6, 4  ;;  %s3550_s19 = scalar_lea.vmem %s722_s0, 2048  ;;  %s757_s10 = int_to_ptr.vmem [resolvable:$true] %s756_s10 }
  0x89   : > { %p3551_p7 = scmp.ne.s32.totalorder %s722_s0, %s3550_s19  ;;  %p3558_p9 = scmp.lt.s32.totalorder %s722_s0, %s722_s0 }
  0x8a   : > { %p3559_p10 = scmp.lt.s32.totalorder %s3550_s19, %s3550_s19 }
  0x8b   : > { %p3553_p1 = pnand %p3551_p7, %p4081_p8 }
  0x8c   : > { %3204 = dma.hbm_to_vmem [thread:$0]  (!%p4071_p6), %s4639_s8, 2048, %s681_s23, [#allocation8], %s4637_s27, %s4637_s27, %s4636_s14  }
  0x8d   : > { %p3554_p5 = pneg %p3553_p1  ;;  %p3560_p0 = por %p3559_p10, %p3558_p9 }
  0x8f   : > { %p3561_p13 = pnand %p3560_p0, %p3554_p5 }
  0x91   : > { %3564 = shalt.err (!%p3561_p13)
}
  0x92   : > { %s4640_s12 = sld [smem:[#allocation50_spill]]  ;;  %s3576_s6 = scalar_lea.vmem %s757_s10, 4096 }
  0x93   : > { %p3577_p11 = scmp.ne.s32.totalorder %s757_s10, %s3576_s6  ;;  %p3584_p1 = scmp.lt.s32.totalorder %s757_s10, %s757_s10 }
  0x94   : > { %p3585_p9 = scmp.lt.s32.totalorder %s3576_s6, %s3576_s6 }
  0x95   : > { %p3579_p3 = pnand %p3577_p11, %p4081_p8 }
  0x96   : > { %p3586_p5 = por %p3585_p9, %p3584_p1 }
  0x97   : > { %p3580_p7 = pneg %p3579_p3 }
  0x98   : > { %3210 = dma.hbm_to_vmem [thread:$0]  (!%p4071_p6), %s4640_s12, 2048, %s722_s0, [#allocation11], %s4637_s27, %s4637_s27, %s4636_s14  }
  0x99   : > { %p3587_p10 = pnand %p3586_p5, %p3580_p7 }
  0x9b   : > { %3590 = shalt.err (!%p3587_p10)
}
  0x9c   : > { %s4641_s19 = smov 16   ;;  %s4642_s3 = smov 256  }
  0x9d   : > { %s4643_s17 = sld [smem:[#allocation54_spill]]  ;;  %s3797_s28 = smov [#allocation18]  }
  0x9e   : > { %s788_s0 = sshll.u32 %s3797_s28, 4  ;;  %s789_s0 = int_to_ptr.vmem [resolvable:$true] %s788_s0 }
  0x9f   : > { %s3602_s23 = scalar_lea.vmem %s789_s0, 4096  ;;  %p3610_p3 = scmp.lt.s32.totalorder %s789_s0, %s789_s0 }
  0xa0   : > { %p3603_p0 = scmp.ne.s32.totalorder %s789_s0, %s3602_s23  ;;  %p3611_p7 = scmp.lt.s32.totalorder %s3602_s23, %s3602_s23 }
  0xa2   : > { %p3605_p13 = pnand %p3603_p0, %p4081_p8  ;;  %p3612_p1 = por %p3611_p7, %p3610_p3 }
  0xa3   : > { %3216 = dma.hbm_to_vmem [thread:$0]  (!%p4071_p6), %s4643_s17, 4096, %s757_s10, [#allocation14], %s4642_s3, %s4642_s3, %s4641_s19  }
  0xa4   : > { %p3606_p11 = pneg %p3605_p13 }
  0xa6   : > { %p3613_p9 = pnand %p3612_p1, %p3606_p11 }
  0xa8   : > { %3616 = shalt.err (!%p3613_p9)
}
  0xa9   : > { %s4644_s21 = sld [smem:[#allocation58_spill]] }
  0xab   : > { %829 = sbr.rel (%p4063_p2) target bundleno = 1960 (0x7a8), region = 112 }
  0xaf   : > { %3222 = dma.hbm_to_vmem [thread:$0]  (!%p4071_p6), %s4644_s21, 4096, %s789_s0, [#allocation17], %s4637_s27, %s4637_s27, %s4636_s14  }
  0xb0   : > { %3714 = dma.done.wait (%p4059_p4), [#allocation5], 2048  }
  0xb1   : > { %3716 = vsyncadd (%p4059_p4), [#allocation5], 4294965248 }
  0xb2   : > { %3718 = dma.done.wait (%p4059_p4), [#allocation8], 2064  }
  0xb3   : > { %3720 = vsyncadd (%p4059_p4), [#allocation8], 4294965232 }
  0xb4   : > { %3722 = dma.done.wait (%p4059_p4), [#allocation11], 4096  }
  0xb5   : > { %3724 = vsyncadd (%p4059_p4), [#allocation11], 4294963200 }
  0xb6   : > { %3726 = dma.done.wait (%p4059_p4), [#allocation14], 6144  }
  0xb7   : > { %3728 = vsyncadd (%p4059_p4), [#allocation14], 4294961152 }
  0xb8   : > { %3730 = dma.done.wait (%p4059_p4), [#allocation17], 8192  }
  0xb9   : > { %3732 = vsyncadd (%p4059_p4), [#allocation17], 4294959104  ;;  %p948_p2 = scmp.lt.s32.totalorder %s3771_s1, 1  ;;  %p950_p6 = scmp.lt.s32.totalorder %s3767_s26, 1 }
  0xba   : > { %s933_s14 = sand.u32 1, %s3759_s7   ;;  %s4645_s16 = sld [smem:[#allocation39_spill]] }
  0xbb   : > { %s949_s30 = scalar_select %p948_p2, %s3771_s1, 1 }
  0xbc   : > { %s951_s18 = scalar_select %p950_p6, %s3767_s26, 1 }
  0xbd   : > { %s2809_s27 = sshll.u32 %s949_s30, 1  ;;  %s2813_s6 = sshll.u32 %s949_s30, 2 }
  0xbe   : > { %s953_s19 = sadd.s32 %s2809_s27, %s951_s18  ;;  %s4213_s20 = scalar_lea.vmem %s4567_s24, %s2813_s6 }
  0xbf   : > { %s2810_s8 = sshll.u32 %s953_s19, 3  ;;  %s4217_s28 = sshll.u32 %s933_s14, 3 }
  0xc0   : > { %s955_s10 = scalar_lea.vmem %s4645_s16, %s2810_s8  ;;  %s4646_s17 = sld [smem:[#allocation40_spill]] }
  0xc1   : > { %v4227_v0 = vld [vmem:[%s955_s10] sm:$0xff]  ;;  %s935_s30 = scalar_lea.vmem [#allocation19], %s4217_s28  ;;  %s4647_s18 = sand.u32 1, %s3747_s2  }
  0xc2   : > { %s4232_s27 = scalar_lea.vmem [#allocation20], %s4647_s18  ;;  %p2814_p4 = scmp.ne.s32.totalorder %s3767_s26, 0 }
  0xc4   : > { %972 = sbr.rel (%p2814_p4) target bundleno = 203 (0xcb), region = 152 }
  0xc6   : > { %s4225_s21 = scalar_lea.vmem %s4646_s17, %s2810_s8 }
  0xc9   : > { %v3798_v1 = vmov 0.0  }
  0xca   : > { %973 = vst [vmem:[#allocation2] sm:$0x7] %v3798_v1  ;;  %974 = vst [vmem:[#allocation3] sm:$0x1] %v3798_v1 }
  0xcb PF: > { %v976_v2 = vmul.f32 %v4227_v0, %v4227_v0  ;;  %v1008_v3 = vld [vmem:[#allocation4 + $0x78] sm:$0xff]  ;;  %v3799_v5 = vmov 0.0   ;;  %v1007_v6 = vld [vmem:[#allocation4 + $0x70] sm:$0xff]  ;;  %v1006_v8 = vld [vmem:[#allocation4 + $0x68] sm:$0xff]  ;;  %vm3800_vm0 = vmmov 0   ;;  %v987_v39 = vlaneseq  ;;  %s4648_s22 = sld [smem:[#allocation41_spill]] }
  0xcc   : > { %v1111_v4 = vld [vmem:[#allocation9 + $0x78] sm:$0xff]  ;;  %2962 = vmatprep.subr.mxu0 %v3799_v5  ;;  %2997 = vmatprep.subr.mxu1 %v3799_v5  ;;  %v1110_v7 = vld [vmem:[#allocation9 + $0x70] sm:$0xff]  ;;  %v1109_v9 = vld [vmem:[#allocation9 + $0x68] sm:$0xff]  ;;  %s4649_s3 = sld [smem:[#allocation45_spill]]  ;;  %vm1194_vm1 = vcmask 1042432   ;;  %vm1218_vm2 = vcmask 1046528  }
  0xcd   : > { %977 = vadd.xlane.f32.xlu0 %v976_v2  ;;  %2963 = vmatpush3.msra.mxu0 %v1008_v3  ;;  %v1005_v10 = vld [vmem:[#allocation4 + $0x60] sm:$0xff]  ;;  %v1004_v12 = vld [vmem:[#allocation4 + $0x58] sm:$0xff]  ;;  %v1003_v14 = vld [vmem:[#allocation4 + $0x50] sm:$0xff]  ;;  %v988_v40 = vshrl.u32 %v987_v39, 7  ;;  %s4650_s0 = sld [smem:[#allocation46_spill]]  ;;  %vm1232_vm3 = vcmask 1045504  }
  0xce   : > { %2998 = vmatpush3.msra.mxu1 %v1111_v4  ;;  %2964 = vmatprep.subr.mxu0 %v3799_v5  ;;  %v1108_v11 = vld [vmem:[#allocation9 + $0x60] sm:$0xff]  ;;  %v1107_v13 = vld [vmem:[#allocation9 + $0x58] sm:$0xff]  ;;  %v1106_v15 = vld [vmem:[#allocation9 + $0x50] sm:$0xff]  ;;  %s4651_s10 = sld [smem:[#allocation47_spill]]  ;;  %vm1246_vm4 = vcmask 1044480   ;;  %vm1258_vm5 = vcmask 261120  }
  0xcf   : > { %2999 = vmatprep.subr.mxu1 %v3799_v5  ;;  %2965 = vmatpush3.msra.mxu0 %v1007_v6  ;;  %v1002_v16 = vld [vmem:[#allocation4 + $0x48] sm:$0xff]  ;;  %v1001_v18 = vld [vmem:[#allocation4 + $0x40] sm:$0xff]  ;;  %v1000_v20 = vld [vmem:[#allocation4 + $0x38] sm:$0xff]  ;;  %v4278_v43 = vsub.s32 0, %v988_v40  ;;  %v4294_v56 = vsub.s32 1, %v988_v40  ;;  %v1226_v57 = vsub.s32 2, %v988_v40 }
  0xd0   : > { %3000 = vmatpush3.msra.mxu1 %v1110_v7  ;;  %2966 = vmatprep.subr.mxu0 %v3799_v5  ;;  %v1105_v17 = vld [vmem:[#allocation9 + $0x48] sm:$0xff]  ;;  %v1104_v19 = vld [vmem:[#allocation9 + $0x40] sm:$0xff]  ;;  %v1103_v21 = vld [vmem:[#allocation9 + $0x38] sm:$0xff]  ;;  %v1240_v60 = vsub.s32 3, %v988_v40  ;;  %s3802_s18 = smov 96   ;;  %s3803_s12 = smov 32  }
  0xd1   : > { %3001 = vmatprep.subr.mxu1 %v3799_v5  ;;  %2967 = vmatpush3.msra.mxu0 %v1006_v8  ;;  %v999_v22 = vld [vmem:[#allocation4 + $0x30] sm:$0xff]  ;;  %v998_v24 = vld [vmem:[#allocation4 + $0x28] sm:$0xff]  ;;  %v997_v26 = vld [vmem:[#allocation4 + $0x20] sm:$0xff]  ;;  %vm1582_vm6 = vcmask 523264   ;;  %vm1584_vm7 = vcmask 785408   ;;  %vm2019_vm10 = vcmask 1040384  }
  0xd2   : > { %3002 = vmatpush3.msra.mxu1 %v1109_v9  ;;  %2968 = vmatprep.subr.mxu0 %v3799_v5  ;;  %v1102_v23 = vld [vmem:[#allocation9 + $0x30] sm:$0xff]  ;;  %v1101_v25 = vld [vmem:[#allocation9 + $0x28] sm:$0xff]  ;;  %v1100_v27 = vld [vmem:[#allocation9 + $0x20] sm:$0xff]  ;;  %vm2021_vm11 = vcmask 1041408   ;;  %vm2024_vm12 = vcmask 1043456   ;;  %s4653_s23 = sld [smem:[#allocation52_spill]] }
  0xd3   : > { %3003 = vmatprep.subr.mxu1 %v3799_v5  ;;  %2969 = vmatpush3.msra.mxu0 %v1005_v10  ;;  %v996_v28 = vld [vmem:[#allocation4 + $0x18] sm:$0xff]  ;;  %v995_v30 = vld [vmem:[#allocation4 + $0x10] sm:$0xff]  ;;  %v994_v32 = vld [vmem:[#allocation4 + $0x8] sm:$0xff]  ;;  %s4656_s6 = sld [smem:[#allocation57_spill]]  ;;  %s2833_s19 = sshll.u32 %s3771_s1, 4 }
  0xd4   : > { %3004 = vmatpush3.msra.mxu1 %v1108_v11  ;;  %2970 = vmatprep.subr.mxu0 %v3799_v5  ;;  %v1099_v29 = vld [vmem:[#allocation9 + $0x18] sm:$0xff]  ;;  %v1098_v31 = vld [vmem:[#allocation9 + $0x10] sm:$0xff]  ;;  %v1097_v33 = vld [vmem:[#allocation9 + $0x8] sm:$0xff]  ;;  %s4658_s16 = sand.u32 1, %s3747_s2  }
  0xd5   : > { %3005 = vmatprep.subr.mxu1 %v3799_v5  ;;  %2971 = vmatpush3.msra.mxu0 %v1004_v12  ;;  %v993_v34 = vld [vmem:[#allocation4] sm:$0xff]  ;;  %v984_v41 = vld [vmem:[%s4648_s22] sm:$0x1]  ;;  %v1256_v49 = vld [vmem:[#allocation10 + $0x10] sm:$0xff]  ;;  %s4652_s22 = sld [smem:[#allocation48_spill]] }
  0xd6   : > { %3006 = vmatpush3.msra.mxu1 %v1107_v13  ;;  %2972 = vmatprep.subr.mxu0 %v3799_v5  ;;  %v1096_v35 = vld [vmem:[#allocation9] sm:$0xff]  ;;  %v985_v42 = vadd.f32 1.0, %v984_v41  ;;  %v1257_v48 = vld [vmem:[#allocation10 + $0x18] sm:$0xff]  ;;  %v1255_v50 = vld [vmem:[#allocation10 + $0x8] sm:$0xff] }
  0xd7   : > { %3007 = vmatprep.subr.mxu1 %v3799_v5  ;;  %2973 = vmatpush3.msra.mxu0 %v1003_v14  ;;  %v1254_v51 = vld [vmem:[#allocation10] sm:$0xff]  ;;  %v1336_v52 = vld [vmem:[#allocation10 + $0x38] sm:$0xff]  ;;  %v1335_v53 = vld [vmem:[#allocation10 + $0x30] sm:$0xff] }
  0xd8   : > { %3008 = vmatpush3.msra.mxu1 %v1106_v15  ;;  %2974 = vmatprep.subr.mxu0 %v3799_v5  ;;  %v990_v44 = vrot.slane %v985_v42, %v4278_v43  ;;  %v1334_v54 = vld [vmem:[#allocation10 + $0x28] sm:$0xff]  ;;  %v1333_v55 = vld [vmem:[#allocation10 + $0x20] sm:$0xff]  ;;  %v2816_v58 = vld [vmem:[%s4649_s3] ss:$0 sm:$0xff]  ;;  %s2549_s3 = sshll.u32 %s4232_s27, 4  ;;  %s2550_s3 = int_to_ptr.vmem [resolvable:$true] %s2549_s3 }
  0xd9   : > { %3009 = vmatprep.subr.mxu1 %v3799_v5  ;;  %2975 = vmatpush3.msra.mxu0 %v1002_v16  ;;  %v1196_v59 = vld [vmem:[%s4650_s0] sm:$0xf]  ;;  %v1493_v40 = vld [vmem:[#allocation10 + $0x70] sm:$0xff]  ;;  %v1492_v42 = vld [vmem:[#allocation10 + $0x68] sm:$0xff]  ;;  %s4657_s0 = sld [smem:[#allocation61_spill]] }
  0xda   : > { %3010 = vmatpush3.msra.mxu1 %v1105_v17  ;;  %2976 = vmatprep.subr.mxu0 %v3799_v5  ;;  %v1213_v1 = vrot.slane %v1196_v59, %v4294_v56  ;;  %v1227_v2 = vrot.slane %v1196_v59, %v1226_v57  ;;  %v1190_v3 = vld [vmem:[#allocation2] sm:$0x7]  ;;  %v1201_v4 = vrot.slane %v1196_v59, %v4278_v43  ;;  %v1600_v41 = vld [vmem:[#allocation12 + $0x10] sm:$0xff] }
  0xdb   : > { %3011 = vmatprep.subr.mxu1 %v3799_v5  ;;  %2977 = vmatpush3.msra.mxu0 %v1001_v18  ;;  %v1241_v6 = vrot.slane %v1196_v59, %v1240_v60  ;;  %v2817_v13 = vld [vmem:[%s4651_s10] ss:$0 sm:$0xff]  ;;  %v1824_v59 = vld [vmem:[#allocation12 + $0x68] sm:$0xff]  ;;  %v1823_v60 = vld [vmem:[#allocation12 + $0x60] sm:$0xff]  ;;  %s2519_s10 = scalar_lea.sflag [#allocation21], %s4658_s16 }
  0xdc   : > { %3012 = vmatpush3.msra.mxu1 %v1104_v19  ;;  %2978 = vmatprep.subr.mxu0 %v3799_v5  ;;  %v1826_v57 = vld [vmem:[#allocation12 + $0x78] sm:$0xff] }
  0xdd   : > { %3013 = vmatprep.subr.mxu1 %v3799_v5  ;;  %2979 = vmatpush3.msra.mxu0 %v1000_v20 }
  0xde   : > { %3014 = vmatpush3.msra.mxu1 %v1103_v21  ;;  %2980 = vmatprep.subr.mxu0 %v3799_v5 }
  0xdf   : > { %3015 = vmatprep.subr.mxu1 %v3799_v5  ;;  %2981 = vmatpush3.msra.mxu0 %v999_v22 }
  0xe0   : > { %3016 = vmatpush3.msra.mxu1 %v1102_v23  ;;  %2982 = vmatprep.subr.mxu0 %v3799_v5 }
  0xe1   : > { %3017 = vmatprep.subr.mxu1 %v3799_v5  ;;  %2983 = vmatpush3.msra.mxu0 %v998_v24 }
  0xe2   : > { %3018 = vmatpush3.msra.mxu1 %v1101_v25  ;;  %2984 = vmatprep.subr.mxu0 %v3799_v5 }
  0xe3   : > { %3019 = vmatprep.subr.mxu1 %v3799_v5  ;;  %2985 = vmatpush3.msra.mxu0 %v997_v26 }
  0xe4   : > { %3020 = vmatpush3.msra.mxu1 %v1100_v27  ;;  %2986 = vmatprep.subr.mxu0 %v3799_v5 }
  0xe5   : > { %3021 = vmatprep.subr.mxu1 %v3799_v5  ;;  %2987 = vmatpush3.msra.mxu0 %v996_v28 }
  0xe6   : > { %3022 = vmatpush3.msra.mxu1 %v1099_v29  ;;  %2988 = vmatprep.subr.mxu0 %v3799_v5 }
  0xe7   : > { %3023 = vmatprep.subr.mxu1 %v3799_v5  ;;  %2989 = vmatpush3.msra.mxu0 %v995_v30 }
  0xe8   : > { %3024 = vmatpush3.msra.mxu1 %v1098_v31  ;;  %2990 = vmatprep.subr.mxu0 %v3799_v5 }
  0xe9   : > { %3025 = vmatprep.subr.mxu1 %v3799_v5  ;;  %2991 = vmatpush3.msra.mxu0 %v994_v32  ;;  %v1415_v32 = vld [vmem:[#allocation10 + $0x58] sm:$0xff] }
  0xea   : > { %3026 = vmatpush3.msra.mxu1 %v1097_v33  ;;  %2992 = vmatprep.subr.mxu0 %v3799_v5  ;;  %v1414_v33 = vld [vmem:[#allocation10 + $0x50] sm:$0xff] }
  0xeb   : > { %3027 = vmatprep.subr.mxu1 %v3799_v5  ;;  %2993 = vmatpush3.msra.mxu0 %v993_v34  ;;  %v1413_v34 = vld [vmem:[#allocation10 + $0x48] sm:$0xff] }
  0xec   : > { %2994 = vmatprep.mubr.msk.f32.mxu0 %vm3800_vm0, %v3799_v5  ;;  %3028 = vmatpush3.msra.mxu1 %v1096_v35  ;;  %v1412_v35 = vld [vmem:[#allocation10 + $0x40] sm:$0xff] }
  0xed   : > { %3029 = vmatprep.mubr.msk.f32.mxu1 %vm3800_vm0, %v3799_v5  ;;  %3032 = vmatprep.subr.mxu0 %v3799_v5 }
  0xee   : > { %3043 = vmatprep.subr.mxu1 %v3799_v5 }
 0x156   : > { %v978_v36 = vpop.xlane.xlu0 %977 }
 0x157   : > { %v980_v37 = vmul.f32 0.0078125, %v978_v36  ;;  %v1494_v36 = vld [vmem:[#allocation10 + $0x78] sm:$0xff] }
 0x159   : > { %v981_v38 = vadd.f32 1e-06, %v980_v37  ;;  %v1601_v37 = vld [vmem:[#allocation12 + $0x18] sm:$0xff] }
 0x15b   : > { %3359 = vrsqrt.f32 %v981_v38 }
 0x168   : > { %v3360_v45 = vpop.eup %3359 }
 0x169   : > { %v983_v46 = vmul.f32 %v3360_v45, %v4227_v0  ;;  %v1491_v45 = vld [vmem:[#allocation10 + $0x60] sm:$0xff] }
 0x16b   : > { %v992_v47 = vmul.f32 %v990_v44, %v983_v46  ;;  %v1599_v44 = vld [vmem:[#allocation12 + $0x8] sm:$0xff]  ;;  %v1598_v46 = vld [vmem:[#allocation12] sm:$0xff] }
 0x16d   : > { %2995 = vmatmul.mubr.f32.vlgmr.msra.gmra.mxu0 %v992_v47  ;;  %3030 = vmatmul.mubr.f32.vlgmr.msra.gmra.mxu1 %v992_v47 }
 0x16e   : > { %3040 = vmatprep.mubr.msk.f32.mxu0 %vm3800_vm0, %v3799_v5  ;;  %3051 = vmatprep.mubr.msk.f32.mxu1 %vm3800_vm0, %v3799_v5 }
 0x16f   : > { %3033 = vmatpush3.msra.mxu0 %v1257_v48  ;;  %3044 = vmatpush3.msra.mxu1 %v1336_v52  ;;  %v1676_v48 = vld [vmem:[#allocation12 + $0x38] sm:$0xff]  ;;  %v1674_v52 = vld [vmem:[#allocation12 + $0x28] sm:$0xff] }
 0x170   : > { %3034 = vmatprep.subr.mxu0 %v3799_v5  ;;  %3045 = vmatprep.subr.mxu1 %v3799_v5 }
 0x171   : > { %3035 = vmatpush3.msra.mxu0 %v1256_v49  ;;  %3046 = vmatpush3.msra.mxu1 %v1335_v53  ;;  %v1751_v49 = vld [vmem:[#allocation12 + $0x58] sm:$0xff]  ;;  %v1749_v53 = vld [vmem:[#allocation12 + $0x48] sm:$0xff] }
 0x172   : > { %3036 = vmatprep.subr.mxu0 %v3799_v5  ;;  %3047 = vmatprep.subr.mxu1 %v3799_v5 }
 0x173   : > { %3037 = vmatpush3.msra.mxu0 %v1255_v50  ;;  %3048 = vmatpush3.msra.mxu1 %v1334_v54  ;;  %v1675_v50 = vld [vmem:[#allocation12 + $0x30] sm:$0xff]  ;;  %v1673_v54 = vld [vmem:[#allocation12 + $0x20] sm:$0xff] }
 0x174   : > { %3038 = vmatprep.subr.mxu0 %v3799_v5  ;;  %3049 = vmatprep.subr.mxu1 %v3799_v5 }
 0x175   : > { %3039 = vmatpush3.msra.mxu0 %v1254_v51  ;;  %3050 = vmatpush3.msra.mxu1 %v1333_v55  ;;  %v1750_v51 = vld [vmem:[#allocation12 + $0x50] sm:$0xff]  ;;  %v1748_v55 = vld [vmem:[#allocation12 + $0x40] sm:$0xff] }
 0x176   : > { %3054 = vmatprep.subr.mxu0 %v3799_v5  ;;  %3065 = vmatprep.subr.mxu1 %v3799_v5 }
 0x22d   : > { %v4302_v61 = vpop.f32.mrf.mxu0  ;;  %v1178_v62 = vpop.f32.mrf.mxu1 }
 0x22e   : > { %v1189_v63 = vadd.f32 %v2816_v58, %v1178_v62  ;;  %v1825_v58 = vld [vmem:[#allocation12 + $0x70] sm:$0xff] }
 0x22f   : > { %v2996_v7 = vpop.f32.mrf.mxu0  ;;  %v3031_v8 = vpop.f32.mrf.mxu1 }
 0x230   : > { %v1192_v9 = vrot.slane %v1189_v63, 5 }
 0x232   : > { %v1195_v10 = vsel %vm1194_vm1, %v1190_v3, %v1192_v9  ;;  %v1215_v11 = vmul.f32 %v1213_v1, %v1192_v9  ;;  %v1229_v12 = vmul.f32 %v1227_v2, %v1192_v9  ;;  %1252 = vst [vmem:[#allocation2] sm:$0x7] %v1192_v9  ;;  %1253 = vst [vmem:[%s4213_s20] sm:$0x7] %v1192_v9  ;;  %s3801_s20 = smov 64  }
 0x233   : > { %v1202_v14 = vmul.f32 %v1201_v4, %v1195_v10  ;;  %v1214_v15 = vmul.f32 %v1213_v1, %v1195_v10  ;;  %v1228_v16 = vmul.f32 %v1227_v2, %v1195_v10  ;;  %v1242_v17 = vmul.f32 %v1241_v6, %v1195_v10 }
 0x234   : > { %v1220_v18 = vrot.slane %v1215_v11, 1  ;;  %v1243_v19 = vmul.f32 %v1241_v6, %v1192_v9  ;;  %v1234_v22 = vrot.slane %v1229_v12, 2  ;;  %v3804_v1 = vmov 0   ;;  %v975_v11 = vld [vmem:[%s4225_s21] sm:$0xff]  ;;  %s4655_s21 = sld [smem:[#allocation55_spill]] }
 0x235   : > { %v1219_v20 = vrot.slane %v1214_v15, 1  ;;  %v1233_v21 = vrot.slane %v1228_v16, 2  ;;  %v1209_v23 = vadd.f32 %v2817_v13, %v1202_v14  ;;  %v1247_v26 = vrot.slane %v1242_v17, 3  ;;  %3357 = vset.pattern.permute.xlu1 %v3804_v1  ;;  %3358 = vset.pattern.permute.xlu0 %v3804_v1 }
 0x236   : > { %v1248_v24 = vrot.slane %v1243_v19, 3  ;;  %v2047_v19 = vld [vmem:[#allocation13 + $0x78] sm:$0xff] }
 0x237   : > { %v1221_v25 = vsel %vm1218_vm2, %v1219_v20, %v1220_v18  ;;  %v1235_v28 = vsel %vm1232_vm3, %v1233_v21, %v1234_v22  ;;  %v1956_v18 = vsub.f32 1.0, %v975_v11  ;;  %v2046_v20 = vld [vmem:[#allocation13 + $0x70] sm:$0xff]  ;;  %v2045_v21 = vld [vmem:[#allocation13 + $0x68] sm:$0xff]  ;;  %v2044_v22 = vld [vmem:[#allocation13 + $0x60] sm:$0xff] }
 0x238   : > { %v1223_v27 = vadd.f32 %v1221_v25, %v1209_v23  ;;  %v1249_v30 = vsel %vm1246_vm4, %v1247_v26, %v1248_v24  ;;  %v2043_v23 = vld [vmem:[#allocation13 + $0x58] sm:$0xff]  ;;  %v2042_v24 = vld [vmem:[#allocation13 + $0x50] sm:$0xff]  ;;  %v2041_v25 = vld [vmem:[#allocation13 + $0x48] sm:$0xff] }
 0x239   : > { %v2040_v26 = vld [vmem:[#allocation13 + $0x40] sm:$0xff] }
 0x23a   : > { %v1237_v29 = vadd.f32 %v1235_v28, %v1223_v27  ;;  %v2039_v27 = vld [vmem:[#allocation13 + $0x38] sm:$0xff]  ;;  %v2038_v28 = vld [vmem:[#allocation13 + $0x30] sm:$0xff] }
 0x23c   : > { %v4314_v31 = vadd.f32 %v1249_v30, %v1237_v29  ;;  %v2037_v29 = vld [vmem:[#allocation13 + $0x28] sm:$0xff]  ;;  %v1925_v30 = vld [vmem:[%s4652_s22] sm:$0x1] }
 0x23e   : > { %1416 = vrot.lane.b32.xlu1 %v4314_v31, %s3801_s20  ;;  %1337 = vrot.lane.b32.xlu0 %v4314_v31, %s3802_s18 }
 0x23f   : > { %3041 = vmatmul.mubr.msk.f32.vlgmr.msra.gmra.mxu0 %vm1258_vm5, %v4314_v31 }
 0x240   : > { %3055 = vmatpush3.msra.mxu0 %v1415_v32  ;;  %3062 = vmatprep.mubr.msk.f32.mxu0 %vm3800_vm0, %v3799_v5  ;;  %v2036_v32 = vld [vmem:[#allocation13 + $0x20] sm:$0xff] }
 0x241   : > { %3056 = vmatprep.subr.mxu0 %v3799_v5 }
 0x242   : > { %1495 = vrot.lane.b32.xlu1 %v4314_v31, %s3803_s12  ;;  %3057 = vmatpush3.msra.mxu0 %v1414_v33  ;;  %v1927_v33 = vand.u32 2147483647, %v1925_v30 }
 0x243   : > { %3058 = vmatprep.subr.mxu0 %v3799_v5 }
 0x244   : > { %3059 = vmatpush3.msra.mxu0 %v1413_v34  ;;  %v2035_v34 = vld [vmem:[#allocation13 + $0x18] sm:$0xff] }
 0x245   : > { %3060 = vmatprep.subr.mxu0 %v3799_v5 }
 0x246   : > { %3061 = vmatpush3.msra.mxu0 %v1412_v35  ;;  %v2034_v35 = vld [vmem:[#allocation13 + $0x10] sm:$0xff] }
 0x247   : > { %3076 = vmatprep.subr.mxu0 %v3799_v5 }
 0x2b0   : > { %v1417_v38 = vpop.permute.xlu1 %1416  ;;  %v1338_v39 = vpop.permute.xlu0 %1337 }
 0x2b1   : > { %3052 = vmatmul.mubr.msk.f32.vlgmr.msra.gmra.mxu1 %vm1258_vm5, %v1338_v39  ;;  %3063 = vmatmul.mubr.msk.f32.vlgmr.msra.gmra.mxu0 %vm1258_vm5, %v1417_v38 }
 0x2b2   : > { %3066 = vmatpush3.msra.mxu1 %v1494_v36  ;;  %3077 = vmatpush3.msra.mxu0 %v1601_v37  ;;  %v1928_v36 = vsub.f32 0.0, %v1927_v33  ;;  %v2033_v37 = vld [vmem:[#allocation13 + $0x8] sm:$0xff] }
 0x2b3   : > { %3067 = vmatprep.subr.mxu1 %v3799_v5  ;;  %3078 = vmatprep.subr.mxu0 %v3799_v5 }
 0x2b4   : > { %3068 = vmatpush3.msra.mxu1 %v1493_v40  ;;  %3079 = vmatpush3.msra.mxu0 %v1600_v41  ;;  %v1496_v47 = vpop.permute.xlu1 %1495 }
 0x2b5   : > { %3069 = vmatprep.subr.mxu1 %v3799_v5  ;;  %3080 = vmatprep.subr.mxu0 %v3799_v5 }
 0x2b6   : > { %3070 = vmatpush3.msra.mxu1 %v1492_v42  ;;  %3081 = vmatpush3.msra.mxu0 %v1599_v44 }
 0x2b7   : > { %3071 = vmatprep.subr.mxu1 %v3799_v5  ;;  %3082 = vmatprep.subr.mxu0 %v3799_v5 }
 0x2b8   : > { %3072 = vmatpush3.msra.mxu1 %v1491_v45  ;;  %3073 = vmatprep.mubr.msk.f32.mxu1 %vm3800_vm0, %v3799_v5 }
 0x2b9   : > { %3083 = vmatpush3.msra.mxu0 %v1598_v46  ;;  %3084 = vmatprep.mubr.msk.f32.mxu0 %vm3800_vm0, %v3799_v5  ;;  %v2827_v46 = vld [vmem:[%s4556_s13] ss:$0 sm:$0xff] }
 0x2ba   : > { %3074 = vmatmul.mubr.msk.f32.vlgmr.msra.gmra.mxu1 %vm1258_vm5, %v1496_v47  ;;  %3085 = vmatmul.mubr.msk.f32.vlgmr.msra.gmra.mxu0 %vm1258_vm5, %v4314_v31 }
 0x2bb   : > { %3087 = vmatprep.subr.mxu1 %v3799_v5  ;;  %3098 = vmatprep.subr.mxu0 %v3799_v5 }
 0x2bc   : > { %3088 = vmatpush3.msra.mxu1 %v1676_v48  ;;  %3099 = vmatpush3.msra.mxu0 %v1751_v49 }
 0x2bd   : > { %3089 = vmatprep.subr.mxu1 %v3799_v5  ;;  %3100 = vmatprep.subr.mxu0 %v3799_v5 }
 0x2be   : > { %3090 = vmatpush3.msra.mxu1 %v1675_v50  ;;  %3101 = vmatpush3.msra.mxu0 %v1750_v51 }
 0x2bf   : > { %3091 = vmatprep.subr.mxu1 %v3799_v5  ;;  %3102 = vmatprep.subr.mxu0 %v3799_v5 }
 0x2c0   : > { %3092 = vmatpush3.msra.mxu1 %v1674_v52  ;;  %3103 = vmatpush3.msra.mxu0 %v1749_v53  ;;  %v1926_v53 = vmax.f32 %v1925_v30, 0.0 }
 0x2c1   : > { %3093 = vmatprep.subr.mxu1 %v3799_v5  ;;  %3104 = vmatprep.subr.mxu0 %v3799_v5 }
 0x2c2   : > { %3094 = vmatpush3.msra.mxu1 %v1673_v54  ;;  %3095 = vmatprep.mubr.msk.f32.mxu1 %vm3800_vm0, %v3799_v5 }
 0x2c3   : > { %3105 = vmatpush3.msra.mxu0 %v1748_v55  ;;  %3106 = vmatprep.mubr.msk.f32.mxu0 %vm3800_vm0, %v3799_v5 }
 0x2c4   : > { %3096 = vmatmul.mubr.msk.f32.vlgmr.msra.gmra.mxu1 %vm1258_vm5, %v1338_v39  ;;  %3107 = vmatmul.mubr.msk.f32.vlgmr.msra.gmra.mxu0 %vm1258_vm5, %v1417_v38  ;;  %v2032_v38 = vld [vmem:[#allocation13] sm:$0xff]  ;;  %v1929_v39 = vmul.f32 1.442695, %v1928_v36 }
 0x2c5   : > { %3109 = vmatprep.subr.mxu1 %v3799_v5  ;;  %3117 = vmatprep.mubr.msk.f32.mxu1 %vm3800_vm0, %v3799_v5 }
 0x2c6   : > { %3110 = vmatpush3.msra.mxu1 %v1826_v57  ;;  %3120 = vmatprep.subr.mxu0 %v3799_v5  ;;  %3361 = vpow2.f32 %v1929_v39 }
 0x2c7   : > { %3111 = vmatprep.subr.mxu1 %v3799_v5  ;;  %3152 = vmatprep.mubr.msk.f32.mxu0 %vm3800_vm0, %v3799_v5 }
 0x2c8   : > { %3112 = vmatpush3.msra.mxu1 %v1825_v58  ;;  %3121 = vmatpush3.msra.mxu0 %v2047_v19 }
 0x2c9   : > { %3113 = vmatprep.subr.mxu1 %v3799_v5  ;;  %3122 = vmatprep.subr.mxu0 %v3799_v5 }
 0x2ca   : > { %3114 = vmatpush3.msra.mxu1 %v1824_v59  ;;  %3123 = vmatpush3.msra.mxu0 %v2046_v20 }
 0x2cb   : > { %3115 = vmatprep.subr.mxu1 %v3799_v5  ;;  %3124 = vmatprep.subr.mxu0 %v3799_v5 }
 0x2cc   : > { %3116 = vmatpush3.msra.mxu1 %v1823_v60  ;;  %3125 = vmatpush3.msra.mxu0 %v2045_v21 }
 0x2cd   : > { %3118 = vmatmul.mubr.msk.f32.vlgmr.msra.gmra.mxu1 %vm1258_vm5, %v1496_v47  ;;  %3126 = vmatprep.subr.mxu0 %v3799_v5 }
 0x2ce   : > { %2239 = vmatprep.mubr.f32.mxu1 %v3799_v5  ;;  %3127 = vmatpush3.msra.mxu0 %v2044_v22  ;;  %v1971_v22 = vld [vmem:[#allocation3] sm:$0x1] }
 0x2cf   : > { %3128 = vmatprep.subr.mxu0 %v3799_v5 }
 0x2d0   : > { %3129 = vmatpush3.msra.mxu0 %v2043_v23 }
 0x2d1   : > { %3130 = vmatprep.subr.mxu0 %v3799_v5 }
 0x2d2   : > { %3131 = vmatpush3.msra.mxu0 %v2042_v24 }
 0x2d3   : > { %3132 = vmatprep.subr.mxu0 %v3799_v5  ;;  %v3362_v40 = vpop.eup %3361 }
 0x2d4   : > { %3133 = vmatpush3.msra.mxu0 %v2041_v25  ;;  %v1931_v42 = vadd.f32 1.0, %v3362_v40 }
 0x2d5   : > { %3134 = vmatprep.subr.mxu0 %v3799_v5 }
 0x2d6   : > { %3135 = vmatpush3.msra.mxu0 %v2040_v26  ;;  %3363 = vlog2.f32 %v1931_v42  ;;  %v2815_v42 = vld [vmem:[#allocation7] ss:$0 sm:$0xff] }
 0x2d7   : > { %3136 = vmatprep.subr.mxu0 %v3799_v5 }
 0x2d8   : > { %3137 = vmatpush3.msra.mxu0 %v2039_v27 }
 0x2d9   : > { %3138 = vmatprep.subr.mxu0 %v3799_v5 }
 0x2da   : > { %3139 = vmatpush3.msra.mxu0 %v2038_v28 }
 0x2db   : > { %3140 = vmatprep.subr.mxu0 %v3799_v5 }
 0x2dc   : > { %3141 = vmatpush3.msra.mxu0 %v2037_v29 }
 0x2dd   : > { %3142 = vmatprep.subr.mxu0 %v3799_v5 }
 0x2de   : > { %3143 = vmatpush3.msra.mxu0 %v2036_v32 }
 0x2df   : > { %3144 = vmatprep.subr.mxu0 %v3799_v5 }
 0x2e0   : > { %3145 = vmatpush3.msra.mxu0 %v2035_v34 }
 0x2e1   : > { %3146 = vmatprep.subr.mxu0 %v3799_v5 }
 0x2e2   : > { %3147 = vmatpush3.msra.mxu0 %v2034_v35 }
 0x2e3   : > { %3148 = vmatprep.subr.mxu0 %v3799_v5  ;;  %v3364_v52 = vpop.eup %3363 }
 0x2e4   : > { %3149 = vmatpush3.msra.mxu0 %v2033_v37  ;;  %v1933_v54 = vmul.f32 0.6931472, %v3364_v52 }
 0x2e5   : > { %3150 = vmatprep.subr.mxu0 %v3799_v5 }
 0x2e6   : > { %3151 = vmatpush3.msra.mxu0 %v2032_v38  ;;  %v1934_v55 = vadd.f32 %v1933_v54, %v1926_v53 }
 0x2e8   : > { %v1939_v59 = vrot.slane %v1934_v55, %v4278_v43 }
 0x2ff   : > { %v4370_v62 = vpop.f32.mrf.mxu0 }
 0x301   : > { %v3042_v63 = vpop.f32.mrf.mxu0 }
 0x371   : > { %v1407_v2 = vpop.f32.mrf.mxu1  ;;  %v1486_v3 = vpop.f32.mrf.mxu0 }
 0x373   : > { %v3053_v4 = vpop.f32.mrf.mxu1  ;;  %v3064_v6 = vpop.f32.mrf.mxu0 }
 0x37a   : > { %v1565_v7 = vpop.f32.mrf.mxu1  ;;  %v4372_v8 = vpop.f32.mrf.mxu0 }
 0x37b   : > { %1578 = vrot.lane.b32.xlu0 %v1565_v7, %s3802_s18 }
 0x37c   : > { %v3075_v9 = vpop.f32.mrf.mxu1  ;;  %v3086_v10 = vpop.f32.mrf.mxu0 }
 0x37d   : > { %v2822_v10 = vld [vmem:[%s4554_s11] ss:$0 sm:$0xff] }
 0x37f   : > { %1965 = vperm.xlu0 %3358, %v975_v11  }
 0x384   : > { %v1743_v12 = vpop.f32.mrf.mxu1  ;;  %v1818_v13 = vpop.f32.mrf.mxu0 }
 0x385   : > { %1898 = vrot.lane.b32.xlu1 %v1743_v12, %s3803_s12 }
 0x386   : > { %v3097_v14 = vpop.f32.mrf.mxu1  ;;  %v3108_v15 = vpop.f32.mrf.mxu0 }
 0x389   : > { %1902 = vrot.lane.b32.xlu1 %v1818_v13, %s3801_s20 }
 0x38d   : > { %v1893_v16 = vpop.f32.mrf.mxu1 }
 0x38e   : > { %1906 = vrot.lane.b32.xlu1 %v1893_v16, %s3802_s18  ;;  %s3805_s18 = smov [#allocation20]  }
 0x38f   : > { %v3119_v17 = vpop.f32.mrf.mxu1 }
 0x392   : > { %1570 = vrot.lane.b32.xlu1 %v1407_v2, %s3803_s12  ;;  %s3621_s12 = sshll.u32 %s3805_s18, 4  ;;  %s3622_s12 = int_to_ptr.vmem [resolvable:$false] %s3621_s12 }
 0x393   : > { %p3624_p0 = scmp.lt.s32.totalorder %s2550_s3, %s3622_s12 }
 0x396   : > { %1574 = vrot.lane.b32.xlu1 %v1486_v3, %s3801_s20  ;;  %s4654_s20 = sld [smem:[#allocation53_spill]] }
 0x39a   : > { %1959 = vperm.xlu1 %3357, %v1956_v18  }
 0x3ed   : > { %v1579_v9 = vpop.permute.xlu0 %1578 }
 0x3f7   : > { %v1899_v41 = vpop.permute.xlu1 %1898 }
 0x3f8   : > { %v1909_v45 = vsel %vm1258_vm5, %v4372_v8, %v1899_v41 }
 0x3fa   : > { %v1966_v28 = vpop.permute.xlu0 %1965 }
 0x3fb   : > { %v1903_v44 = vpop.permute.xlu1 %1902 }
 0x3fc   : > { %v1910_v47 = vsel %vm1582_vm6, %v1909_v45, %v1903_v44 }
 0x400   : > { %v1907_v48 = vpop.permute.xlu1 %1906 }
 0x401   : > { %v1911_v49 = vsel %vm1584_vm7, %v1910_v47, %v1907_v48 }
 0x402   : > { %v1919_v50 = vadd.f32 %v2827_v46, %v1911_v49  ;;  %v1086_v46 = vadd.f32 %v2815_v42, %v4302_v61  ;;  %v2165_v42 = vld [vmem:[#allocation15 + $0xb0] sm:$0xff] }
 0x404   : > { %v1920_v51 = vmul.f32 0.5, %v1919_v50  ;;  %v1571_v63 = vpop.permute.xlu1 %1570 }
 0x405   : > { %v1581_v7 = vsel %vm1258_vm5, %v4370_v62, %v1571_v63 }
 0x406   : > { %3365 = vtanh.f32 %v1920_v51 }
 0x408   : > { %v1575_v4 = vpop.permute.xlu1 %1574 }
 0x409   : > { %v1583_v8 = vsel %vm1582_vm6, %v1581_v7, %v1575_v4 }
 0x40a   : > { %v1585_v11 = vsel %vm1584_vm7, %v1583_v8, %v1579_v9 }
 0x40b   : > { %v1593_v12 = vadd.f32 %v2822_v10, %v1585_v11 }
 0x40d   : > { %v1594_v13 = vmul.f32 0.5, %v1593_v12 }
 0x413   : > { %v3366_v57 = vpop.eup %3365 }
 0x414   : > { %v1922_v58 = vadd.f32 1.0, %v3366_v57 }
 0x415   : > { %v1960_v23 = vpop.permute.xlu1 %1959 }
 0x416   : > { %v1923_v60 = vmul.f32 0.5, %v1922_v58  ;;  %v1972_v29 = vmul.f32 %v1971_v22, %v1960_v23  ;;  %v1975_v36 = vrot.slane %v1960_v23, 1 }
 0x418   : > { %v1924_v1 = vmul.f32 -8.0, %v1923_v60 }
 0x41a   : > { %v1941_v2 = vmul.f32 %v1939_v59, %v1924_v1 }
 0x41c   : > { %v1942_v3 = vmul.f32 1.442695, %v1941_v2  ;;  %v1944_v6 = vsub.f32 0.0, %v1941_v2 }
 0x41e   : > { %3367 = vpow2.f32 %v1942_v3 }
 0x41f   : > { %3369 = vtanh.f32 %v1944_v6 }
 0x420   : > { %3371 = vtanh.f32 %v1594_v13 }
 0x42b   : > { %v4414_v14 = vpop.eup %3367 }
 0x42c   : > { %v1946_v15 = vmul.f32 %v4414_v14, %v4414_v14  ;;  %v3370_v62 = vpop.eup %3369  ;;  %v1973_v34 = vmul.f32 %v4414_v14, %v1972_v29  ;;  %v2307_v29 = vld [vmem:[#allocation16 + $0xe8] sm:$0xff] }
 0x42d   : > { %v3372_v18 = vpop.eup %3371 }
 0x42e   : > { %v1947_v16 = vadd.f32 1.0, %v1946_v15  ;;  %v1596_v19 = vadd.f32 1.0, %v3372_v18 }
 0x430   : > { %v1948_v17 = vmul.f32 %v3370_v62, %v1947_v16  ;;  %v1597_v25 = vmul.f32 0.5, %v1596_v19 }
 0x432   : > { %3373 = vrsqrt.f32 %v1948_v17  ;;  %vm1951_vm8 = vcmp.eq.f32.partialorder %v1948_v17, inf  ;;  %v1954_v24 = vand.u32 2147483648, %v1948_v17  ;;  %vm1953_vm9 = vcmp.eq.f32.partialorder %v1948_v17, 0.0 }
 0x433   : > { %v1969_v32 = vmul.f32 %v1597_v25, %v4314_v31  ;;  %v1088_v31 = vmul.f32 0.044715, %v1086_v46  ;;  %v2174_v25 = vld [vmem:[#allocation15 + $0xf8] sm:$0xff] }
 0x434   : > { %2175 = vmatprep.subr.mxu1 %v2174_v25  ;;  %v2146_v25 = vld [vmem:[#allocation15 + $0x18] sm:$0xff] }
 0x435   : > { %v1089_v51 = vmul.f32 %v1088_v31, %v1086_v46 }
 0x437   : > { %v1090_v54 = vmul.f32 %v1089_v51, %v1086_v46  ;;  %v2299_v51 = vld [vmem:[#allocation16 + $0xa8] sm:$0xff] }
 0x439   : > { %v1091_v58 = vadd.f32 %v1090_v54, %v1086_v46  ;;  %v2162_v54 = vld [vmem:[#allocation15 + $0x98] sm:$0xff] }
 0x43b   : > { %v1092_v63 = vmul.f32 0.7978846, %v1091_v58  ;;  %v2296_v58 = vld [vmem:[#allocation16 + $0x90] sm:$0xff] }
 0x43d   : > { %3375 = vtanh.f32 %v1092_v63  ;;  %v2294_v63 = vld [vmem:[#allocation16 + $0x80] sm:$0xff] }
 0x43f   : > { %v3374_v20 = vpop.eup %3373 }
 0x440   : > { %v1950_v21 = vmul.f32 %v3374_v20, %v1948_v17 }
 0x442   : > { %v1952_v26 = vsel %vm1951_vm8, %v1948_v17, %v1950_v21  ;;  %v1087_v17 = vmul.f32 0.5, %v1086_v46 }
 0x443   : > { %v1955_v27 = vsel %vm1953_vm9, %v1954_v24, %v1952_v26  ;;  %v2173_v26 = vld [vmem:[#allocation15 + $0xf0] sm:$0xff] }
 0x444   : > { %v1962_v30 = vmul.f32 %v1960_v23, %v1955_v27  ;;  %v2308_v27 = vld [vmem:[#allocation16 + $0xf0] sm:$0xff]  ;;  %2176 = vmatpush1.msra.mxu1 %v2173_v26 }
 0x445   : > { %v2145_v26 = vld [vmem:[#allocation15 + $0x10] sm:$0xff] }
 0x446   : > { %v1968_v33 = vadd.f32 %v1966_v28, %v1962_v30  ;;  %v2172_v28 = vld [vmem:[#allocation15 + $0xe8] sm:$0xff]  ;;  %v2171_v30 = vld [vmem:[#allocation15 + $0xe0] sm:$0xff] }
 0x447   : > { %2177 = vmatprep.subr.mxu1 %v2172_v28  ;;  %v2144_v28 = vld [vmem:[#allocation15 + $0x8] sm:$0xff] }
 0x448   : > { %v1970_v35 = vmul.f32 %v1969_v32, %v1968_v33  ;;  %v2306_v32 = vld [vmem:[#allocation16 + $0xe0] sm:$0xff]  ;;  %v2170_v33 = vld [vmem:[#allocation15 + $0xd8] sm:$0xff]  ;;  %2178 = vmatpush1.msra.mxu1 %v2171_v30 }
 0x449   : > { %2179 = vmatprep.subr.mxu1 %v2170_v33  ;;  %v2143_v30 = vld [vmem:[#allocation15] sm:$0xff] }
 0x44a   : > { %v1974_v37 = vadd.f32 %v1973_v34, %v1970_v35  ;;  %v3376_v9 = vpop.eup %3375  ;;  %v2305_v34 = vld [vmem:[#allocation16 + $0xd8] sm:$0xff] }
 0x44b   : > { %v1094_v13 = vadd.f32 1.0, %v3376_v9  ;;  %v2154_v9 = vld [vmem:[#allocation15 + $0x58] sm:$0xff] }
 0x44c   : > { %v1977_v38 = vmul.f32 %v1975_v36, %v1974_v37 }
 0x44d   : > { %v1095_v21 = vmul.f32 %v1094_v13, %v1087_v17  ;;  %v2152_v13 = vld [vmem:[#allocation15 + $0x48] sm:$0xff]  ;;  %v2150_v17 = vld [vmem:[#allocation15 + $0x38] sm:$0xff] }
 0x44e   : > { %v1979_v39 = vrot.slane %v1977_v38, 7  ;;  %v2167_v38 = vld [vmem:[#allocation15 + $0xc0] sm:$0xff] }
 0x450   : > { %v1981_v40 = vmul.f32 %v4414_v14, %v1979_v39  ;;  %v2302_v39 = vld [vmem:[#allocation16 + $0xc0] sm:$0xff] }
 0x452   : > { %v1982_v41 = vadd.f32 %v1981_v40, %v1970_v35  ;;  %v2166_v40 = vld [vmem:[#allocation15 + $0xb8] sm:$0xff] }
 0x454   : > { %v1983_v44 = vmul.f32 %v1982_v41, %v1975_v36  ;;  %v2020_v12 = vsel %vm2019_vm10, %v1974_v37, %v1982_v41  ;;  %v2303_v37 = vld [vmem:[#allocation16 + $0xc8] sm:$0xff]  ;;  %v2301_v41 = vld [vmem:[#allocation16 + $0xb8] sm:$0xff] }
 0x456   : > { %v1985_v45 = vrot.slane %v1983_v44, 7  ;;  %v2300_v44 = vld [vmem:[#allocation16 + $0xb0] sm:$0xff] }
 0x458   : > { %v1987_v47 = vmul.f32 %v4414_v14, %v1985_v45  ;;  %v2828_v45 = vld [vmem:[%s4653_s23] ss:$0 sm:$0xff]  ;;  %s2547_s23 = scalar_lea.hbm %s4657_s0, %s2833_s19 }
 0x45a   : > { %v1988_v48 = vadd.f32 %v1987_v47, %v1970_v35 }
 0x45c   : > { %v1989_v49 = vmul.f32 %v1988_v48, %v1975_v36  ;;  %v2022_v15 = vsel %vm2021_vm11, %v2020_v12, %v1988_v48  ;;  %v2288_v12 = vld [vmem:[#allocation16 + $0x50] sm:$0xff] }
 0x45e   : > { %v1991_v50 = vrot.slane %v1989_v49, 7 }
 0x460   : > { %v1993_v52 = vmul.f32 %v4414_v14, %v1991_v50  ;;  %v2164_v50 = vld [vmem:[#allocation15 + $0xa8] sm:$0xff] }
 0x462   : > { %v1994_v53 = vadd.f32 %v1993_v52, %v1970_v35  ;;  %v2163_v52 = vld [vmem:[#allocation15 + $0xa0] sm:$0xff] }
 0x464   : > { %v1995_v55 = vmul.f32 %v1994_v53, %v1975_v36  ;;  %v2023_v62 = vsel %vm1194_vm1, %v2022_v15, %v1994_v53  ;;  %v2298_v53 = vld [vmem:[#allocation16 + $0xa0] sm:$0xff]  ;;  %v2287_v15 = vld [vmem:[#allocation16 + $0x48] sm:$0xff] }
 0x466   : > { %v1997_v57 = vrot.slane %v1995_v55, 7  ;;  %v2297_v55 = vld [vmem:[#allocation16 + $0x98] sm:$0xff] }
 0x468   : > { %v1999_v59 = vmul.f32 %v4414_v14, %v1997_v57  ;;  %v2161_v57 = vld [vmem:[#allocation15 + $0x90] sm:$0xff] }
 0x46a   : > { %v2000_v60 = vadd.f32 %v1999_v59, %v1970_v35  ;;  %v2295_v59 = vld [vmem:[#allocation16 + $0x88] sm:$0xff] }
 0x46c   : > { %v2001_v1 = vmul.f32 %v2000_v60, %v1975_v36  ;;  %v2025_v18 = vsel %vm2024_vm12, %v2023_v62, %v2000_v60  ;;  %v2159_v60 = vld [vmem:[#allocation15 + $0x80] sm:$0xff] }
 0x46d   : > { %v2286_v62 = vld [vmem:[#allocation16 + $0x40] sm:$0xff] }
 0x46e   : > { %v2003_v61 = vrot.slane %v2001_v1, 7  ;;  %v2158_v1 = vld [vmem:[#allocation15 + $0x78] sm:$0xff] }
 0x470   : > { %v2005_v2 = vmul.f32 %v4414_v14, %v2003_v61  ;;  %v2293_v61 = vld [vmem:[#allocation16 + $0x78] sm:$0xff] }
 0x472   : > { %v2006_v3 = vadd.f32 %v2005_v2, %v1970_v35  ;;  %v2157_v2 = vld [vmem:[#allocation15 + $0x70] sm:$0xff] }
 0x474   : > { %v2007_v4 = vmul.f32 %v2006_v3, %v1975_v36  ;;  %v2026_v20 = vsel %vm1246_vm4, %v2025_v18, %v2006_v3  ;;  %v2292_v3 = vld [vmem:[#allocation16 + $0x70] sm:$0xff]  ;;  %v2285_v18 = vld [vmem:[#allocation16 + $0x38] sm:$0xff] }
 0x476   : > { %v2009_v6 = vrot.slane %v2007_v4, 7  ;;  %v2156_v4 = vld [vmem:[#allocation15 + $0x68] sm:$0xff] }
 0x478   : > { %v2011_v7 = vmul.f32 %v4414_v14, %v2009_v6  ;;  %v2291_v6 = vld [vmem:[#allocation16 + $0x68] sm:$0xff] }
 0x47a   : > { %v2012_v8 = vadd.f32 %v2011_v7, %v1970_v35  ;;  %v2155_v7 = vld [vmem:[#allocation15 + $0x60] sm:$0xff] }
 0x47c   : > { %v2013_v10 = vmul.f32 %v2012_v8, %v1975_v36  ;;  %v2027_v22 = vsel %vm1232_vm3, %v2026_v20, %v2012_v8  ;;  %v2304_v36 = vld [vmem:[#allocation16 + $0xd0] sm:$0xff]  ;;  %v2290_v8 = vld [vmem:[#allocation16 + $0x60] sm:$0xff] }
 0x47d   : > { %v2284_v20 = vld [vmem:[#allocation16 + $0x30] sm:$0xff] }
 0x47e   : > { %v2015_v11 = vrot.slane %v2013_v10, 7  ;;  %v2289_v10 = vld [vmem:[#allocation16 + $0x58] sm:$0xff] }
 0x480   : > { %v2017_v16 = vmul.f32 %v4414_v14, %v2015_v11  ;;  %v2309_v14 = vld [vmem:[#allocation16 + $0xf8] sm:$0xff]  ;;  %v2153_v11 = vld [vmem:[#allocation15 + $0x50] sm:$0xff] }
 0x481   : > { %2310 = vmatprep.subr.mxu0 %v2309_v14  ;;  %v2281_v14 = vld [vmem:[#allocation16 + $0x18] sm:$0xff] }
 0x482   : > { %v2018_v19 = vadd.f32 %v2017_v16, %v1970_v35  ;;  %v2169_v35 = vld [vmem:[#allocation15 + $0xd0] sm:$0xff]  ;;  %v2151_v16 = vld [vmem:[#allocation15 + $0x40] sm:$0xff] }
 0x483   : > { %2180 = vmatpush1.msra.mxu1 %v2169_v35 }
 0x484   : > { %v2028_v23 = vsel %vm1218_vm2, %v2027_v22, %v2018_v19  ;;  %2029 = vst [vmem:[#allocation3 - $0x7] sm:$0x80] %v2018_v19  ;;  %2030 = vst [vmem:[%s4232_s27 - $0x7] sm:$0x80] %v2018_v19  ;;  %v2149_v19 = vld [vmem:[#allocation15 + $0x30] sm:$0xff]  ;;  %v2283_v22 = vld [vmem:[#allocation16 + $0x28] sm:$0xff] }
 0x485   : > { %v2031_v24 = vmul.f32 %v2028_v23, %v1095_v21  ;;  %v2148_v21 = vld [vmem:[#allocation15 + $0x28] sm:$0xff]  ;;  %v2147_v23 = vld [vmem:[#allocation15 + $0x20] sm:$0xff] }
 0x487   : > { %3153 = vmatmul.mubr.f32.vlgmr.msra.gmra.mxu0 %v2031_v24  ;;  %v2282_v24 = vld [vmem:[#allocation16 + $0x20] sm:$0xff] }
 0x488   : > { %2374 = vmatprep.mubr.f32.mxu0 %v3799_v5  ;;  %2311 = vmatpush1.msra.mxu0 %v2308_v27  ;;  %v2168_v5 = vld [vmem:[#allocation15 + $0xc8] sm:$0xff]  ;;  %v2280_v27 = vld [vmem:[#allocation16 + $0x10] sm:$0xff] }
 0x489   : > { %2312 = vmatprep.subr.mxu0 %v2307_v29  ;;  %2181 = vmatprep.subr.mxu1 %v2168_v5  ;;  %v2279_v29 = vld [vmem:[#allocation16 + $0x8] sm:$0xff] }
 0x48a   : > { %2313 = vmatpush1.msra.mxu0 %v2306_v32  ;;  %2182 = vmatpush1.msra.mxu1 %v2167_v38  ;;  %v2278_v32 = vld [vmem:[#allocation16] sm:$0xff] }
 0x48b   : > { %2314 = vmatprep.subr.mxu0 %v2305_v34  ;;  %2183 = vmatprep.subr.mxu1 %v2166_v40 }
 0x48c   : > { %2315 = vmatpush1.msra.mxu0 %v2304_v36  ;;  %2184 = vmatpush1.msra.mxu1 %v2165_v42  ;;  %v2134_v36 = vld [vmem:[%s4654_s20] sm:$0x1]  ;;  %s3617_s20 = scalar_lea.vmem %s2550_s3, 16 }
 0x48d   : > { %2316 = vmatprep.subr.mxu0 %v2303_v37  ;;  %2185 = vmatprep.subr.mxu1 %v2164_v50  ;;  %v2135_v5 = vadd.f32 1.0, %v2134_v36  ;;  %v2412_v42 = vld [vmem:[#allocation18 + $0x78] sm:$0xff]  ;;  %p3618_p8 = scmp.ne.s32.totalorder %s2550_s3, %s3617_s20 }
 0x48e   : > { %2317 = vmatpush1.msra.mxu0 %v2302_v39  ;;  %2186 = vmatpush1.msra.mxu1 %v2163_v52  ;;  %v2424_v50 = vld [vmem:[#allocation18 + $0xd8] sm:$0xff]  ;;  %v2423_v52 = vld [vmem:[#allocation18 + $0xd0] sm:$0xff] }
 0x48f   : > { %2318 = vmatprep.subr.mxu0 %v2301_v41  ;;  %2187 = vmatprep.subr.mxu1 %v2162_v54  ;;  %v2140_v37 = vrot.slane %v2135_v5, %v4278_v43  ;;  %v2428_v41 = vld [vmem:[#allocation18 + $0xf8] sm:$0xff]  ;;  %v2422_v54 = vld [vmem:[#allocation18 + $0xc8] sm:$0xff]  ;;  %p3619_p5 = pnand %p3618_p8, %p4039_p12 }
 0x490   : > { %2319 = vmatpush1.msra.mxu0 %v2300_v44  ;;  %2188 = vmatpush1.msra.mxu1 %v2161_v57  ;;  %v2427_v44 = vld [vmem:[#allocation18 + $0xf0] sm:$0xff]  ;;  %v2421_v57 = vld [vmem:[#allocation18 + $0xc0] sm:$0xff] }
 0x491   : > { %2320 = vmatprep.subr.mxu0 %v2299_v51  ;;  %v2408_v51 = vld [vmem:[#allocation18 + $0x58] sm:$0xff]  ;;  %p3620_p10 = pneg %p3619_p5 }
 0x492   : > { %2321 = vmatpush1.msra.mxu0 %v2298_v53  ;;  %v2407_v53 = vld [vmem:[#allocation18 + $0x50] sm:$0xff] }
 0x493   : > { %2322 = vmatprep.subr.mxu0 %v2297_v55  ;;  %v2406_v55 = vld [vmem:[#allocation18 + $0x48] sm:$0xff] }
 0x494   : > { %2323 = vmatpush1.msra.mxu0 %v2296_v58  ;;  %v2405_v58 = vld [vmem:[#allocation18 + $0x40] sm:$0xff] }
 0x495   : > { %2324 = vmatprep.subr.mxu0 %v2295_v59  ;;  %v2404_v59 = vld [vmem:[#allocation18 + $0x38] sm:$0xff] }
 0x496   : > { %2325 = vmatpush1.msra.mxu0 %v2294_v63  ;;  %v2403_v63 = vld [vmem:[#allocation18 + $0x30] sm:$0xff] }
 0x497   : > { %2326 = vmatprep.subr.mxu0 %v2293_v61  ;;  %v2402_v61 = vld [vmem:[#allocation18 + $0x28] sm:$0xff] }
 0x498   : > { %2327 = vmatpush1.msra.mxu0 %v2292_v3  ;;  %v2401_v3 = vld [vmem:[#allocation18 + $0x20] sm:$0xff] }
 0x499   : > { %2328 = vmatprep.subr.mxu0 %v2291_v6  ;;  %v2400_v6 = vld [vmem:[#allocation18 + $0x18] sm:$0xff] }
 0x49a   : > { %2329 = vmatpush1.msra.mxu0 %v2290_v8  ;;  %v2399_v8 = vld [vmem:[#allocation18 + $0x10] sm:$0xff] }
 0x49b   : > { %2330 = vmatprep.subr.mxu0 %v2289_v10  ;;  %v2398_v10 = vld [vmem:[#allocation18 + $0x8] sm:$0xff] }
 0x49c   : > { %2331 = vmatpush1.msra.mxu0 %v2288_v12  ;;  %v2397_v12 = vld [vmem:[#allocation18] sm:$0xff] }
 0x49d   : > { %2332 = vmatprep.subr.mxu0 %v2287_v15 }
 0x49e   : > { %2333 = vmatpush1.msra.mxu0 %v2286_v62 }
 0x49f   : > { %2334 = vmatprep.subr.mxu0 %v2285_v18 }
 0x4a0   : > { %2335 = vmatpush1.msra.mxu0 %v2284_v20 }
 0x4a1   : > { %2336 = vmatprep.subr.mxu0 %v2283_v22 }
 0x4a2   : > { %2337 = vmatpush1.msra.mxu0 %v2282_v24 }
 0x4a3   : > { %2338 = vmatprep.subr.mxu0 %v2281_v14 }
 0x4a4   : > { %2339 = vmatpush1.msra.mxu0 %v2280_v27 }
 0x4a5   : > { %2340 = vmatprep.subr.mxu0 %v2279_v29 }
 0x4a6   : > { %2341 = vmatpush1.msra.mxu0 %v2278_v32 }
 0x547   : > { %v2114_v46 = vpop.f32.mrf.mxu0 }
 0x548   : > { %v2125_v47 = vadd.f32 %v2828_v45, %v2114_v46  ;;  %v2411_v45 = vld [vmem:[#allocation18 + $0x70] sm:$0xff]  ;;  %v2426_v46 = vld [vmem:[#allocation18 + $0xe8] sm:$0xff] }
 0x549   : > { %v3154_v48 = vpop.f32.mrf.mxu0 }
 0x54a   : > { %v4438_v31 = vadd.f32 %v2125_v47, %v4227_v0  ;;  %v2160_v0 = vld [vmem:[#allocation15 + $0x88] sm:$0xff]  ;;  %v2425_v48 = vld [vmem:[#allocation18 + $0xe0] sm:$0xff] }
 0x54b   : > { %2189 = vmatprep.subr.mxu1 %v2160_v0  ;;  %v2410_v47 = vld [vmem:[#allocation18 + $0x68] sm:$0xff]  ;;  %v2420_v0 = vld [vmem:[#allocation18 + $0xb8] sm:$0xff] }
 0x54c   : > { %v2127_v49 = vmul.f32 %v4438_v31, %v4438_v31  ;;  %2190 = vmatpush1.msra.mxu1 %v2159_v60  ;;  %v2419_v60 = vld [vmem:[#allocation18 + $0xb0] sm:$0xff] }
 0x54d   : > { %2191 = vmatprep.subr.mxu1 %v2158_v1  ;;  %v2418_v1 = vld [vmem:[#allocation18 + $0xa8] sm:$0xff] }
 0x54e   : > { %2128 = vadd.xlane.f32.xlu1 %v2127_v49  ;;  %2192 = vmatpush1.msra.mxu1 %v2157_v2  ;;  %v2409_v49 = vld [vmem:[#allocation18 + $0x60] sm:$0xff] }
 0x54f   : > { %2193 = vmatprep.subr.mxu1 %v2156_v4  ;;  %v2417_v2 = vld [vmem:[#allocation18 + $0xa0] sm:$0xff]  ;;  %v2416_v4 = vld [vmem:[#allocation18 + $0x98] sm:$0xff] }
 0x550   : > { %2194 = vmatpush1.msra.mxu1 %v2155_v7  ;;  %v2415_v7 = vld [vmem:[#allocation18 + $0x90] sm:$0xff] }
 0x551   : > { %2195 = vmatprep.subr.mxu1 %v2154_v9  ;;  %v2414_v9 = vld [vmem:[#allocation18 + $0x88] sm:$0xff] }
 0x552   : > { %2196 = vmatpush1.msra.mxu1 %v2153_v11  ;;  %v2413_v11 = vld [vmem:[#allocation18 + $0x80] sm:$0xff] }
 0x553   : > { %2197 = vmatprep.subr.mxu1 %v2152_v13  ;;  %v2246_v13 = vld [vmem:[%s4655_s21] sm:$0x3]  ;;  %s3623_s21 = scalar_lea.vmem %s3622_s12, 32 }
 0x554   : > { %2198 = vmatpush1.msra.mxu1 %v2151_v16  ;;  %v2251_v15 = vrot.slane %v2246_v13, %v4278_v43  ;;  %v2255_v16 = vrot.slane %v2246_v13, %v4294_v56  ;;  %p3625_p13 = scmp.lt.s32.totalorder %s3623_s21, %s3617_s20 }
 0x555   : > { %2199 = vmatprep.subr.mxu1 %v2150_v17 }
 0x556   : > { %2200 = vmatpush1.msra.mxu1 %v2149_v19  ;;  %p3626_p11 = por %p3625_p13, %p3624_p0 }
 0x557   : > { %2201 = vmatprep.subr.mxu1 %v2148_v21 }
 0x558   : > { %2202 = vmatpush1.msra.mxu1 %v2147_v23  ;;  %p3627_p3 = pnand %p3626_p11, %p3620_p10 }
 0x559   : > { %2203 = vmatprep.subr.mxu1 %v2146_v25 }
 0x55a   : > { %2204 = vmatpush1.msra.mxu1 %v2145_v26 }
 0x55b   : > { %2205 = vmatprep.subr.mxu1 %v2144_v28 }
 0x55c   : > { %2206 = vmatpush1.msra.mxu1 %v2143_v30  ;;  %v2381_v30 = vld [vmem:[%s4656_s6] sm:$0x3] }
 0x55d   : > { %2927 = vmatprep.subr.mxu1 %v2428_v41  ;;  %v2386_v5 = vrot.slane %v2381_v30, %v4278_v43 }
 0x5d7   : > { %v2129_v33 = vpop.xlane.xlu1 %2128 }
 0x5d8   : > { %v2130_v34 = vmul.f32 0.0078125, %v2129_v33 }
 0x5da   : > { %v2131_v35 = vadd.f32 1e-06, %v2130_v34  ;;  %v2390_v34 = vrot.slane %v2381_v30, %v4294_v56 }
 0x5dc   : > { %3377 = vrsqrt.f32 %v2131_v35 }
 0x5e9   : > { %v3378_v38 = vpop.eup %3377 }
 0x5ea   : > { %v2133_v39 = vmul.f32 %v3378_v38, %v4438_v31 }
 0x5ec   : > { %v2142_v40 = vmul.f32 %v2140_v37, %v2133_v39 }
 0x5ee   : > { %2240 = vmatmul.mubr.f32.vlgmr.msra.gmra.mxu1 %v2142_v40  ;;  %2375 = vmatmul.mubr.f32.vlgmr.msra.gmra.mxu0 %v2142_v40 }
 0x5ef   : > { %2928 = vmatpush3.msra.mxu1 %v2412_v42 }
 0x5f0   : > { %2929 = vmatprep.subr.mxu1 %v2427_v44 }
 0x5f1   : > { %2930 = vmatpush3.msra.mxu1 %v2411_v45 }
 0x5f2   : > { %2931 = vmatprep.subr.mxu1 %v2426_v46 }
 0x5f3   : > { %2932 = vmatpush3.msra.mxu1 %v2410_v47 }
 0x5f4   : > { %2933 = vmatprep.subr.mxu1 %v2425_v48 }
 0x5f5   : > { %2934 = vmatpush3.msra.mxu1 %v2409_v49 }
 0x5f6   : > { %2935 = vmatprep.subr.mxu1 %v2424_v50 }
 0x5f7   : > { %2936 = vmatpush3.msra.mxu1 %v2408_v51 }
 0x5f8   : > { %2937 = vmatprep.subr.mxu1 %v2423_v52 }
 0x5f9   : > { %2938 = vmatpush3.msra.mxu1 %v2407_v53 }
 0x5fa   : > { %2939 = vmatprep.subr.mxu1 %v2422_v54 }
 0x5fb   : > { %2940 = vmatpush3.msra.mxu1 %v2406_v55 }
 0x5fc   : > { %2941 = vmatprep.subr.mxu1 %v2421_v57 }
 0x5fd   : > { %2942 = vmatpush3.msra.mxu1 %v2405_v58 }
 0x5fe   : > { %2943 = vmatprep.subr.mxu1 %v2420_v0 }
 0x5ff   : > { %2944 = vmatpush3.msra.mxu1 %v2404_v59 }
 0x600   : > { %2945 = vmatprep.subr.mxu1 %v2419_v60 }
 0x601   : > { %2946 = vmatpush3.msra.mxu1 %v2403_v63 }
 0x602   : > { %2947 = vmatprep.subr.mxu1 %v2418_v1 }
 0x603   : > { %2948 = vmatpush3.msra.mxu1 %v2402_v61 }
 0x604   : > { %2949 = vmatprep.subr.mxu1 %v2417_v2 }
 0x605   : > { %2950 = vmatpush3.msra.mxu1 %v2401_v3 }
 0x606   : > { %2951 = vmatprep.subr.mxu1 %v2416_v4 }
 0x607   : > { %2952 = vmatpush3.msra.mxu1 %v2400_v6 }
 0x608   : > { %2953 = vmatprep.subr.mxu1 %v2415_v7 }
 0x609   : > { %2954 = vmatpush3.msra.mxu1 %v2399_v8 }
 0x60a   : > { %2955 = vmatprep.subr.mxu1 %v2414_v9 }
 0x60b   : > { %2956 = vmatpush3.msra.mxu1 %v2398_v10 }
 0x60c   : > { %2957 = vmatprep.subr.mxu1 %v2413_v11 }
 0x60d   : > { %2958 = vmatpush3.msra.mxu1 %v2397_v12 }
 0x6ae   : > { %v2241_v62 = vpop.f32.mrf.mxu1  ;;  %v2376_v29 = vpop.f32.mrf.mxu0 }
 0x6af   : > { %v2258_v17 = vadd.f32 %v2251_v15, %v2241_v62  ;;  %v2393_v44 = vadd.f32 %v2386_v5, %v2376_v29 }
 0x6b0   : > { %v2243_v18 = vpop.f32.mrf.mxu1  ;;  %v2378_v37 = vpop.f32.mrf.mxu0 }
 0x6b1   : > { %v2262_v19 = vmul.f32 0.044715, %v2258_v17  ;;  %v2259_v20 = vadd.f32 %v2255_v16, %v2243_v18  ;;  %v2260_v36 = vmul.f32 0.5, %v2258_v17  ;;  %v2394_v42 = vadd.f32 %v2390_v34, %v2378_v37 }
 0x6b3   : > { %v2264_v21 = vmul.f32 %v2262_v19, %v2258_v17  ;;  %v2263_v22 = vmul.f32 0.044715, %v2259_v20  ;;  %v2261_v38 = vmul.f32 0.5, %v2259_v20 }
 0x6b5   : > { %v2266_v23 = vmul.f32 %v2264_v21, %v2258_v17  ;;  %v2265_v24 = vmul.f32 %v2263_v22, %v2259_v20 }
 0x6b7   : > { %v2268_v25 = vadd.f32 %v2266_v23, %v2258_v17  ;;  %v2267_v14 = vmul.f32 %v2265_v24, %v2259_v20 }
 0x6b9   : > { %v2270_v26 = vmul.f32 0.7978846, %v2268_v25  ;;  %v2269_v27 = vadd.f32 %v2267_v14, %v2259_v20 }
 0x6bb   : > { %3379 = vtanh.f32 %v2270_v26  ;;  %v2271_v28 = vmul.f32 0.7978846, %v2269_v27 }
 0x6bd   : > { %3381 = vtanh.f32 %v2271_v28 }
 0x6c8   : > { %v3380_v32 = vpop.eup %3379 }
 0x6c9   : > { %v2274_v33 = vadd.f32 1.0, %v3380_v32 }
 0x6ca   : > { %v3382_v35 = vpop.eup %3381 }
 0x6cb   : > { %v2275_v39 = vadd.f32 1.0, %v3382_v35  ;;  %v2276_v40 = vmul.f32 %v2274_v33, %v2260_v36 }
 0x6cd   : > { %v2277_v41 = vmul.f32 %v2275_v39, %v2261_v38  ;;  %v2395_v46 = vmul.f32 %v2393_v44, %v2276_v40 }
 0x6cf   : > { %v2396_v45 = vmul.f32 %v2394_v42, %v2277_v41 }
 0x6d1   : > { %2493 = vmatprep.mubr.f32.mxu1 %v2396_v45 }
 0x6d2   : > { %2494 = vmatmul.mubr.f32.vlgmr.msra.gmra.mxu1 %v2395_v46 }
 0x6d3   : > { %3630 = shalt.err (!%p3627_p3)
}
 0x6d4   : > { %s3631_s27 = scalar_lea.hbm %s2547_s23, 16  ;;  %s3635_s6 = scalar_lea.hbm %s4657_s0, 32 }
 0x6d5   : > { %p3632_p7 = scmp.ne.s32.totalorder %s2547_s23, %s3631_s27  ;;  %p3636_p2 = scmp.lt.s32.totalorder %s2547_s23, %s4657_s0 }
 0x6d6   : > { %p3637_p6 = scmp.lt.s32.totalorder %s3635_s6, %s3631_s27 }
 0x6d7   : > { %p3633_p1 = pnand %p3632_p7, %p4039_p12 }
 0x6d8   : > { %p3638_p4 = por %p3637_p6, %p3636_p2 }
 0x6d9   : > { %p3634_p9 = pneg %p3633_p1 }
 0x6db   : > { %p3639_p8 = pnand %p3638_p4, %p3634_p9 }
 0x6dd   : > { %3642 = shalt.err (!%p3639_p8)
}
 0x6de   : > { %3192 = dma.vmem_to_hbm [thread:$0]  (%p4039_p12), %s2550_s3, 16, %s2547_s23, %s2519_s10  }
 0x6df   : > { %s2831_s8 = sshll.u32 %s3771_s1, 1  ;;  %s4659_s16 = sld [smem:[#allocation35_spill]] }
 0x6e0   : > { %s2529_s20 = sadd.s32 %s3767_s26, %s2831_s8  ;;  %s4660_s21 = sld [smem:[#allocation59_spill]] }
 0x6e1   : > { %s2832_s27 = sshll.u32 %s2529_s20, 7  ;;  %s2533_s17 = sshll.u32 %s935_s30, 4  ;;  %s2534_s17 = int_to_ptr.vmem [resolvable:$true] %s2533_s17 }
 0x6e2   : > { %s4661_s6 = sld [smem:[#allocation60_spill]]  ;;  %s2510_s26 = scalar_lea.sflag [#allocation6], %s933_s14 }
 0x6e3   : > { %s3643_s1 = scalar_lea.vmem %s2534_s17, 128  ;;  %s3806_s23 = smov [#allocation19]  }
 0x6e4   : > { %p3644_p12 = scmp.ne.s32.totalorder %s2534_s17, %s3643_s1  ;;  %s3647_s10 = sshll.u32 %s3806_s23, 4  ;;  %s3648_s10 = int_to_ptr.vmem [resolvable:$false] %s3647_s10 }
 0x6e5   : > { %p4663_p5 = scmp.ne.s32.totalorder %s4659_s16, 0  ;;  %s3649_s25 = scalar_lea.vmem %s3648_s10, 256 }
 0x6e6   : > { %v2829_v47 = vld [vmem:[%s4660_s21] ss:$0 sm:$0xff]  ;;  %p3650_p13 = scmp.lt.s32.totalorder %s2534_s17, %s3648_s10  ;;  %p3651_p11 = scmp.lt.s32.totalorder %s3649_s25, %s3643_s1 }
 0x6e7   : > { %p3645_p10 = pnand %p3644_p12, %p4663_p5 }
 0x6e8   : > { %s4662_s19 = smov %s4661_s6  ;;  %s2531_s3 = scalar_lea.hbm %s4661_s6, %s2832_s27 }
 0x6e9   : > { %p3646_p0 = pneg %p3645_p10  ;;  %p3652_p3 = por %p3651_p11, %p3650_p13 }
 0x6eb   : > { %p3653_p7 = pnand %p3652_p3, %p3646_p0 }
 0x792   : > { %v2959_v43 = vpop.f32.mrf.mxu1 }
 0x794   : > { %v2960_v56 = vpop.f32.mrf.mxu1 }
 0x795   : > { %v2961_v48 = vadd.f32 %v2960_v56, %v2959_v43 }
 0x797   : > { %v2506_v49 = vadd.f32 %v2961_v48, %v2829_v47 }
 0x799   : > { %v2507_v50 = vadd.f32 %v2506_v49, %v4438_v31 }
 0x79b   : > { %2508 = vst [vmem:[%s935_s30] sm:$0xff] %v2507_v50 }
 0x79c   : > { %3656 = shalt.err (!%p3653_p7)
}
 0x79d   : > { %s3657_s8 = scalar_lea.hbm %s2531_s3, 128  ;;  %s3661_s30 = scalar_lea.hbm %s4662_s19, 512 }
 0x79e   : > { %p3658_p1 = scmp.ne.s32.totalorder %s2531_s3, %s3657_s8  ;;  %p3662_p6 = scmp.lt.s32.totalorder %s2531_s3, %s4662_s19 }
 0x79f   : > { %p3663_p4 = scmp.lt.s32.totalorder %s3661_s30, %s3657_s8 }
 0x7a0   : > { %p3659_p9 = pnand %p3658_p1, %p4663_p5 }
 0x7a1   : > { %p3664_p8 = por %p3663_p4, %p3662_p6 }
 0x7a2   : > { %p3660_p2 = pneg %p3659_p9 }
 0x7a4   : > { %p3665_p12 = pnand %p3664_p8, %p3660_p2 }
 0x7a6   : > { %3668 = shalt.err (!%p3665_p12)
}
 0x7a7   : > { %3191 = dma.vmem_to_hbm [thread:$0]  (%p4663_p5), %s2534_s17, 128, %s2531_s3, %s2510_s26  }
 0x7a8 PF: > { %s4664_s12 = sld [smem:[#allocation30_spill]]  ;;  %p3248_p10 = scmp.ge.s32.totalorder %s3783_s4, 2 }
 0x7a9   : > { %p4665_p0 = scmp.ne.s32.totalorder %s4622_s5, 0 }
 0x7ab   : > { %p3224_p13 = pnand %p3248_p10, %p4665_p0 }
 0x7ad   : > { %p3225_p11 = pneg %p3224_p13 }
 0x7ae   : > { %s2561_s21 = sand.u32 1, %s4664_s12  }
 0x7af   : > { %s2562_s27 = scalar_lea.sflag [#allocation6], %s2561_s21 }
 0x7b0   : > { %3734 = dma.done.wait (%p3225_p11), %s2562_s27, 128  }
 0x7b1   : > { %3736 = vsyncadd (%p3225_p11), %s2562_s27, 4294967168  ;;  %s2577_s9 = sand.u32 1, %s3743_s29   ;;  %p4666_p3 = scmp.ne.s32.totalorder %s4626_s15, 0 }
 0x7b2   : > { %s2578_s16 = scalar_lea.sflag [#allocation21], %s2577_s9 }
 0x7b3   : > { %p3227_p7 = pnand %p3248_p10, %p4666_p3 }
 0x7b5   : > { %p3228_p1 = pneg %p3227_p7 }
 0x7b7   : > { %3738 = dma.done.wait (%p3228_p1), %s2578_s16, 16  }
 0x7b8   : > { %3740 = vsyncadd (%p3228_p1), %s2578_s16, 4294967280  ;;  %s47_s4 = sadd.s32 1, %s3783_s4   ;;  %s4667_s17 = sld [smem:[#allocation29_spill]] }
 0x7b9   : > { %p44_p5 = scmp.ge.s32.totalorder %s47_s4, 6   ;;  %s4668_s6 = sld [smem:[#allocation37_spill]] }
 0x7ba   : > { %s4669_s5 = sld [smem:[#allocation31_spill]]  ;;  %s4675_s29 = smov %s3747_s2 }
 0x7bb   : > { %s4670_s3 = sld [smem:[#allocation38_spill]]  ;;  %s4677_s30 = smov %s3759_s7 }
 0x7bc   : > { %s4671_s26 = sld [smem:[#allocation32_spill]]  ;;  %46 = sbr.rel (!%p44_p5) target bundleno = 38 (0x26), region = 226 }
 0x7bd   : > { %s4672_s1 = sld [smem:[#allocation33_spill]] }
 0x7be   : > { %s4673_s8 = sld [smem:[#allocation34_spill]]  ;;  %s4676_s2 = smov %s4667_s17 }
 0x7bf   : > { %s4674_s27 = sld [smem:[#allocation36_spill]] }
 0x7c0   : > { %s4678_s7 = smov %s4669_s5 }
 0x7c1   :  { %2582 = vsyncpa [#allocation5], 1 }
 0x7c2   :  { %2584 = vsyncpa [#allocation5 + $0x1], 1 }
 0x7c3   :  { %2585 = vsyncpa [#allocation8], 1 }
 0x7c4   :  { %2586 = vsyncpa [#allocation11], 1 }
 0x7c5   :  { %2587 = vsyncpa [#allocation14], 1 }
 0x7c6   :  { %2588 = vsyncpa [#allocation17], 1 }
 0x7c7   :  { %2589 = vsyncpa [#allocation6], 1 }
 0x7c8   :  { %2591 = vsyncpa [#allocation6 + $0x1], 1 }
 0x7c9   :  { %2592 = vsyncpa [#allocation21], 1 }
 0x7ca   :  { %2594 = vsyncpa [#allocation21 + $0x1], 1 }

</bundles_post_ra>
